<compile_context>
chip_gen: v5e
topology: v5e:2x2
jax: 0.10.0
libtpu: 0.0.40
codegen_flags: <defaults>
</compile_context>

<pallas_src>
import functools
import math

import jax
import jax.numpy as jnp
from jax import lax
from jax.experimental import pallas as pl
from jax.experimental.pallas import tpu as pltpu

_VMEM_LIMIT = 32 * 1024 * 1024          # safe scoped limit on v5e / v6e / v7x
_CONV_VMEM_BUDGET = 20 * 1024 * 1024    # target working set for conv3x3 tiles


# ---------------------------------------------------------------------------
# tile-size selection helpers
# ---------------------------------------------------------------------------
def _round_up(v, m):
    return ((v + m - 1) // m) * m


def _pick_tm(m, cap=512):
    """Row tile (multiple of 16 for bf16 operands) with minimal padding."""
    n_tiles = -(-m // cap)
    tm = _round_up(-(-m // n_tiles), 16)
    return tm, tm * n_tiles


def _pick_ck_multi(channels):
    """K tile in {512,256,128}: minimal total channel padding, ties -> bigger tile."""
    opts = []
    for tk in (512, 256, 128):
        cps = tuple(_round_up(c, tk) for c in channels)
        opts.append((sum(cps), tk, cps))
    best = min(o[0] for o in opts)
    for tot, tk, cps in opts:                       # ordered big -> small K tile
        if tot <= int(best * 1.05):
            return tk, cps
    return opts[-1][1], opts[-1][2]


def _pick_ck(c):
    tk, cps = _pick_ck_multi([c])
    return tk, cps[0]


def _pick_tn(cout):
    np_ = _round_up(cout, 128)
    for tn in (512, 256, 128):
        if np_ % tn == 0:
            return tn, np_
    return 128, np_


def _pick_tm_conv(mprime, w2, tkc, tn, out_bytes, budget=_CONV_VMEM_BUDGET):
    """Large conv3x3 M tile, capped so the VMEM working set stays inside budget."""
    cap = 1024
    while cap > 128:
        halo = _round_up(cap + 2 * w2 + 2, 16)
        need = (2 * halo * tkc * 2            # A double buffer (bf16)
                + cap * tn * 4                # f32 accumulator
                + 2 * cap * tn * out_bytes    # output double buffer
                + 2 * 9 * tkc * tn * 2)       # weight double buffer (bf16)
        if need <= budget:
            break
        cap //= 2
    n_tiles = -(-mprime // cap)
    tm = _round_up(-(-mprime // n_tiles), 16)
    return tm, tm * n_tiles


# ---------------------------------------------------------------------------
# Pallas matmul kernel (1x1 convs): tiled M/N/K, bf16 operands, f32 accumulate,
# fused bias + optional LeakyReLU epilogue.
# ---------------------------------------------------------------------------
def _mm_kernel(a_ref, b_ref, t_ref, o_ref, acc_ref, *, leaky):
    k = pl.program_id(2)

    @pl.when(k == 0)
    def _():
        acc_ref[...] = jnp.zeros_like(acc_ref)

    acc_ref[...] += jnp.dot(a_ref[...], b_ref[...],
                            preferred_element_type=jnp.float32)

    @pl.when(k == pl.num_programs(2) - 1)
    def _():
        y = acc_ref[...] + t_ref[...]
        if leaky:
            y = jnp.where(y >= 0.0, y, 0.01 * y)      # nn.LeakyReLU() default slope
        o_ref[...] = y.astype(o_ref.dtype)


def matmul_bias_act(a, b_mat, bias, *, leaky=False, out_dtype=jnp.bfloat16):
    """act((a @ b) + bias).  a:(M,K), b:(K,N); bf16 MXU operands, f32 accumulate."""
    m, kdim = a.shape
    _, ncol = b_mat.shape
    tm, mp = _pick_tm(m)
    tk, kp = _pick_ck(kdim)
    tn, np_ = _pick_tn(ncol)

    a_p = a.astype(jnp.bfloat16)
    if (mp, kp) != (m, kdim):
        a_p = jnp.pad(a_p, ((0, mp - m), (0, kp - kdim)))
    b_p = b_mat.astype(jnp.bfloat16)
    if (kp, np_) != (kdim, ncol):
        b_p = jnp.pad(b_p, ((0, kp - kdim), (0, np_ - ncol)))
    t_p = bias.astype(jnp.float32).reshape(1, -1)
    if np_ != ncol:
        t_p = jnp.pad(t_p, ((0, 0), (0, np_ - ncol)))

    out = pl.pallas_call(
        functools.partial(_mm_kernel, leaky=leaky),
        out_shape=jax.ShapeDtypeStruct((mp, np_), out_dtype),
        grid_spec=pltpu.PrefetchScalarGridSpec(
            num_scalar_prefetch=0,
            grid=(mp // tm, np_ // tn, kp // tk),
            in_specs=[pl.BlockSpec((tm, tk), lambda mi, ni, ki: (mi, ki)),
                      pl.BlockSpec((tk, tn), lambda mi, ni, ki: (ki, ni)),
                      pl.BlockSpec((1, tn), lambda mi, ni, ki: (0, ni))],
            out_specs=pl.BlockSpec((tm, tn), lambda mi, ni, ki: (mi, ni)),
            scratch_shapes=[pltpu.VMEM((tm, tn), jnp.float32)]),
        compiler_params=pltpu.CompilerParams(
            dimension_semantics=("parallel", "parallel", "arbitrary"),
            vmem_limit_bytes=_VMEM_LIMIT),
    )(a_p, b_p, t_p)
    if (mp, np_) != (m, ncol):
        out = out[:m, :ncol]
    return out


# ---------------------------------------------------------------------------
# Pallas 3x3 conv kernel: grid K axis = channel chunks only; one halo'd A block is
# manually double-buffer DMA'd per K step; the 9 taps are an in-kernel unrolled loop.
# Supports multiple A-side sources (concat-free UpSampleBN).
# Grid = (batch, M tiles, N tiles, sum_i kcpt_i).
# ---------------------------------------------------------------------------
def _conv3x3_kernel(*args, tm, halo, tkc, w2, kc_splits, leaky, use_scale, n_src):
    a_hbm = args[:n_src]
    pos = n_src
    b_ref = args[pos]; pos += 1
    s_ref = None
    if use_scale:
        s_ref = args[pos]; pos += 1
    t_ref = args[pos]; pos += 1
    o_ref = args[pos]; pos += 1
    a_buf, acc_ref, sem = args[pos], args[pos + 1], args[pos + 2]

    b = pl.program_id(0)
    mi = pl.program_id(1)
    k = pl.program_id(3)
    nk = pl.num_programs(3)
    row0 = pl.multiple_of(mi * tm, 16)

    def start_dma(kk, slot):
        lo = 0
        for si, hi in enumerate(kc_splits):
            @pl.when(jnp.logical_and(kk >= lo, kk < hi))
            def _issue(si=si, lo=lo):
                col0 = pl.multiple_of((kk - lo) * tkc, 128)
                pltpu.make_async_copy(
                    a_hbm[si].at[b, pl.ds(row0, halo), pl.ds(col0, tkc)],
                    a_buf.at[slot], sem.at[slot]).start()
            lo = hi

    def wait_dma(slot):
        # descriptor only needs the right shape/size; address is irrelevant for wait
        pltpu.make_async_copy(
            a_hbm[0].at[b, pl.ds(0, halo), pl.ds(0, tkc)],
            a_buf.at[slot], sem.at[slot]).wait()

    @pl.when(k == 0)
    def _():
        acc_ref[...] = jnp.zeros_like(acc_ref)
        start_dma(k, 0)                           # prime slot 0

    slot = k % 2
    wait_dma(slot)

    @pl.when(k + 1 < nk)
    def _():
        start_dma(k + 1, 1 - slot)                # prefetch next channel chunk

    # 9 taps unrolled in-kernel: static row offsets dy*(W+2)+dx inside the halo'd block
    for tap in range(9):
        dy, dx = tap // 3, tap % 3
        off = dy * w2 + dx
        a_slab = a_buf[slot, pl.ds(off, tm), :]
        acc_ref[...] += jnp.dot(a_slab, b_ref[tap],
                                preferred_element_type=jnp.float32)

    @pl.when(k == nk - 1)
    def _():
        y = acc_ref[...]
        if use_scale:
            y = y * s_ref[...]
        y = y + t_ref[...]
        if leaky:
            y = jnp.where(y >= 0.0, y, 0.01 * y)
        o_ref[0] = y.astype(o_ref.dtype)


def conv3x3(sources, p, bn=None, leaky=False, out_dtype=jnp.bfloat16):
    """3x3 conv (pad=1, stride=1) over NHWC source(s); fused bias/BN/LeakyReLU.

    `sources` may be a list of NHWC tensors with identical (N,H,W); their channels are
    treated as a virtual concatenation in order (concat-free UpSampleBN).  Outputs are
    computed over the padded width W+2 so every tap (dy,dx) is a constant flat row
    offset dy*(W+2)+dx; the 2 junk columns per row are sliced away afterwards.
    """
    if not isinstance(sources, (list, tuple)):
        sources = [sources]
    n, h, w, _ = sources[0].shape
    cins = [int(s.shape[-1]) for s in sources]
    cout = p["w"].shape[0]
    assert p["w"].shape[1] == sum(cins)

    tkc, cps = _pick_ck_multi(cins)
    kcpts = [cp // tkc for cp in cps]
    kc_total = sum(kcpts)
    kc_splits = tuple(sum(kcpts[:i + 1]) for i in range(len(kcpts)))

    w2 = w + 2
    mprime = h * w2
    tn, np_ = _pick_tn(cout)
    out_bytes = jnp.dtype(out_dtype).itemsize
    tm, mp = _pick_tm_conv(mprime, w2, tkc, tn, out_bytes)
    halo = _round_up(tm + 2 * w2 + 2, 16)

    # --- A operands: per-source zero-padded (spatial) + channel-padded, flattened rows
    rows_needed = mp + (halo - tm)
    extra_h = max(1, -(-(rows_needed - (h + 2) * w2) // w2))
    a_ops = []
    for s, c, cp in zip(sources, cins, cps):
        xp = jnp.pad(s.astype(jnp.bfloat16),
                     ((0, 0), (1, 1 + extra_h), (1, 1), (0, cp - c)))
        a_ops.append(xp.reshape(n, (h + 2 + extra_h) * w2, cp))

    # --- B operand: per-source (kcpt_i*9, tkc, np_), chunk-major / tap-minor rows
    wts, off = [], 0
    for c, cp in zip(cins, cps):
        wt = jnp.transpose(p["w"][:, off:off + c], (2, 3, 1, 0)).astype(jnp.bfloat16)
        wt = jnp.pad(wt, ((0, 0), (0, 0), (0, cp - c), (0, np_ - cout)))
        wt = wt.reshape(3, 3, cp // tkc, tkc, np_).transpose(2, 0, 1, 3, 4)
        wts.append(wt.reshape(-1, tkc, np_))
        off += c
    b_mat = jnp.concatenate(wts, axis=0) if len(wts) > 1 else wts[0]

    # --- fused epilogue constants (bias / folded BatchNorm)
    if bn is not None:
        scale = bn["gamma"] / jnp.sqrt(bn["var"] + 1e-5)
        shift = bn["beta"] + scale * (p["b"] - bn["mean"])
    else:
        scale, shift = None, p["b"]
    use_scale = scale is not None
    t_p = shift.astype(jnp.float32).reshape(1, -1)
    if np_ != cout:
        t_p = jnp.pad(t_p, ((0, 0), (0, np_ - cout)))

    n_src = len(sources)
    operands = list(a_ops) + [b_mat]
    in_specs = [pl.BlockSpec(memory_space=pl.ANY)] * n_src
    in_specs.append(pl.BlockSpec((9, tkc, tn), lambda b, mi, ni, kc: (kc, 0, ni)))
    if use_scale:
        s_p = scale.astype(jnp.float32).reshape(1, -1)
        if np_ != cout:
            s_p = jnp.pad(s_p, ((0, 0), (0, np_ - cout)))
        operands.append(s_p)
        in_specs.append(pl.BlockSpec((1, tn), lambda b, mi, ni, kc: (0, ni)))
    operands.append(t_p)
    in_specs.append(pl.BlockSpec((1, tn), lambda b, mi, ni, kc: (0, ni)))

    out = pl.pallas_call(
        functools.partial(_conv3x3_kernel, tm=tm, halo=halo, tkc=tkc, w2=w2,
                          kc_splits=kc_splits, leaky=leaky, use_scale=use_scale,
                          n_src=n_src),
        out_shape=jax.ShapeDtypeStruct((n, mp, np_), out_dtype),
        grid_spec=pltpu.PrefetchScalarGridSpec(
            num_scalar_prefetch=0,
            grid=(n, mp // tm, np_ // tn, kc_total),
            in_specs=in_specs,
            out_specs=pl.BlockSpec((1, tm, tn), lambda b, mi, ni, kc: (b, mi, ni)),
            scratch_shapes=[pltpu.VMEM((2, halo, tkc), jnp.bfloat16),
                            pltpu.VMEM((tm, tn), jnp.float32),
                            pltpu.SemaphoreType.DMA((2,))]),
        compiler_params=pltpu.CompilerParams(
            dimension_semantics=("parallel", "parallel", "parallel", "arbitrary"),
            vmem_limit_bytes=_VMEM_LIMIT),
    )(*operands)

    out = out[:, :mprime, :cout].reshape(n, h, w2, cout)[:, :, :w, :]
    return out


# ---------------------------------------------------------------------------
# Pallas norm_normalize kernel: elementwise, single lane-dense store per block
# ---------------------------------------------------------------------------
def _norm_normalize_kernel(x_ref, o_ref):
    x = x_ref[...]                                        # (1, 4, T)
    n3 = x[:, 0:3, :]
    sq = jnp.sum(n3 * n3, axis=1, keepdims=True)
    inv = 1.0 / (jnp.sqrt(sq) + 1e-10)
    normed = x * inv                                      # valid for channels 0..2
    kap = jnp.where(x > 0.0, x, jnp.expm1(x)) + 1.0 + 0.01  # ELU + 1 + min_kappa
    ch = lax.broadcasted_iota(jnp.int32, x.shape, 1)
    o_ref[...] = jnp.where(ch < 3, normed, kap)


def norm_normalize_pallas(x_nchw):
    n, c, h, w = x_nchw.shape                             # c == 4
    hw = h * w
    t = min(8192, _round_up(hw, 128))
    hwp = _round_up(hw, t)
    flat = x_nchw.reshape(n, c, hw)
    if hwp != hw:
        flat = jnp.pad(flat, ((0, 0), (0, 0), (0, hwp - hw)))
    out = pl.pallas_call(
        _norm_normalize_kernel,
        out_shape=jax.ShapeDtypeStruct((n, c, hwp), jnp.float32),
        grid_spec=pltpu.PrefetchScalarGridSpec(
            num_scalar_prefetch=0,
            grid=(n, hwp // t),
            in_specs=[pl.BlockSpec((1, c, t), lambda b, j: (b, 0, j))],
            out_specs=pl.BlockSpec((1, c, t), lambda b, j: (b, 0, j))),
        compiler_params=pltpu.CompilerParams(
            dimension_semantics=("parallel", "parallel"),
            vmem_limit_bytes=_VMEM_LIMIT),
    )(flat)
    if hwp != hw:
        out = out[:, :, :hw]
    return out.reshape(n, c, h, w)


# ---------------------------------------------------------------------------
# Plain-JAX glue: avg-pool, gather-free bilinear resize (interpolation matrices)
# ---------------------------------------------------------------------------
def _avg_pool(x, factor):                # exact integer-factor average pooling, NHWC
    n, h, w, c = x.shape
    return x.reshape(n, h // factor, factor, w // factor, factor, c).mean(axis=(2, 4))


def _interp_matrix(out_size, in_size, align_corners):
    o = jnp.arange(out_size, dtype=jnp.float32)
    if align_corners:
        scale = (in_size - 1) / (out_size - 1) if out_size > 1 else 0.0
        src = o * scale
    else:
        src = jnp.clip((o + 0.5) * (in_size / out_size) - 0.5, 0.0, in_size - 1)
    i0f = jnp.floor(src)
    frac = src - i0f
    i0 = i0f.astype(jnp.int32)
    i1 = jnp.minimum(i0 + 1, in_size - 1)
    cols = jnp.arange(in_size, dtype=jnp.int32)[None, :]
    w0 = (cols == i0[:, None]).astype(jnp.float32) * (1.0 - frac)[:, None]
    w1 = (cols == i1[:, None]).astype(jnp.float32) * frac[:, None]
    return w0 + w1                                        # (out, in), two nonzeros/row


def bilinear_resize(x, oh, ow, align_corners):            # x: NHWC, gather-free
    n, h, w, c = x.shape
    if (oh, ow) == (h, w):
        return x
    wy = _interp_matrix(oh, h, align_corners).astype(x.dtype)
    wx = _interp_matrix(ow, w, align_corners).astype(x.dtype)
    t = jnp.einsum('oh,nhwc->nowc', wy, x)
    return jnp.einsum('pw,nowc->nopc', wx, t)


# ---------------------------------------------------------------------------
# Conv / UpSampleBN building blocks
# ---------------------------------------------------------------------------
def conv1x1(x, p, out_dtype=jnp.bfloat16):               # x NHWC
    n, h, w, c = x.shape
    cout = p["w"].shape[0]
    wmat = p["w"].reshape(cout, c).T
    y = matmul_bias_act(x.reshape(n * h * w, c), wmat, p["b"], out_dtype=out_dtype)
    return y.reshape(n, h, w, cout)


def up_block(x, skip, p):
    # UpSampleBN: 2x bilinear (align_corners=True) + [virtual concat] + 2x(conv-BN-LeakyReLU)
    up = bilinear_resize(x, skip.shape[1], skip.shape[2], align_corners=True)
    h1 = conv3x3([up, skip], p["convA"], bn=p["bnA"], leaky=True)
    h2 = conv3x3(h1, p["convB"], bn=p["bnB"], leaky=True)
    return h2


# ---------------------------------------------------------------------------
# Parameters (deterministic synthetic init)
# ---------------------------------------------------------------------------
ENC_FEATS = {"b0": (24, 2), "b1": (40, 4), "b2": (64, 8), "b3": (176, 16), "b4": (2048, 32)}


def _conv_init(key, cout, cin, kh, kw):
    kw_, kb = jax.random.split(key)
    fan_in = cin * kh * kw
    return {"w": jax.random.normal(kw_, (cout, cin, kh, kw), jnp.float32) / math.sqrt(fan_in),
            "b": 0.01 * jax.random.normal(kb, (cout,), jnp.float32)}


def _bn_init(key, ch):
    k1, k2, k3, k4 = jax.random.split(key, 4)
    return {"gamma": 1.0 + 0.1 * jax.random.normal(k1, (ch,), jnp.float32),
            "beta": 0.1 * jax.random.normal(k2, (ch,), jnp.float32),
            "mean": 0.1 * jax.random.normal(k3, (ch,), jnp.float32),
            "var": jnp.abs(1.0 + 0.1 * jax.random.normal(k4, (ch,), jnp.float32))}


def init_params(key):
    keys = iter(jax.random.split(key, 64))
    p = {"enc": {name: _conv_init(next(keys), ch, 3, 1, 1)
                 for name, (ch, _) in ENC_FEATS.items()}}
    p["conv2"] = _conv_init(next(keys), 2048, 2048, 1, 1)

    def up(cin, cout):
        return {"convA": _conv_init(next(keys), cout, cin, 3, 3),
                "bnA": _bn_init(next(keys), cout),
                "convB": _conv_init(next(keys), cout, cout, 3, 3),
                "bnB": _bn_init(next(keys), cout)}

    p["up1"] = up(2048 + 176, 1024)
    p["up2"] = up(1024 + 64, 512)
    p["up3"] = up(512 + 40, 256)
    p["up4"] = up(256 + 24, 128)
    p["conv3"] = _conv_init(next(keys), 4, 128, 3, 3)
    return p


# ---------------------------------------------------------------------------
# Full NNET forward
# ---------------------------------------------------------------------------
def encoder_stub(x_nhwc, enc_params):
    # Synthetic stand-in for the pretrained EfficientNet-B5 feature pyramid.
    return {name: conv1x1(_avg_pool(x_nhwc, factor), enc_params[name])
            for name, (_, factor) in ENC_FEATS.items()}


def nnet_forward(params, x_nchw):
    x = jnp.transpose(x_nchw, (0, 2, 3, 1))                    # NCHW -> NHWC
    f = encoder_stub(x, params["enc"])
    x_d0 = conv1x1(f["b4"], params["conv2"])                    # Decoder.conv2 (1x1)
    x_d1 = up_block(x_d0, f["b3"], params["up1"])
    x_d2 = up_block(x_d1, f["b2"], params["up2"])
    x_d3 = up_block(x_d2, f["b1"], params["up3"])
    x_d4 = up_block(x_d3, f["b0"], params["up4"])
    out = conv3x3(x_d4, params["conv3"], bn=None, leaky=False,
                  out_dtype=jnp.float32)                        # (N, H/2, W/2, 4)
    up_out = bilinear_resize(out, x.shape[1], x.shape[2], align_corners=False)
    up_out_nchw = jnp.transpose(up_out, (0, 3, 1, 2))           # back to NCHW
    return norm_normalize_pallas(up_out_nchw)                   # (N, 4, H, W)


# ---------------------------------------------------------------------------
# lightweight correctness spot-check of the fused multi-source 3x3 conv
# ---------------------------------------------------------------------------
def _check_conv3x3():
    kc = jax.random.split(jax.random.PRNGKey(42), 5)
    xa = jax.random.normal(kc[0], (1, 8, 10, 40), jnp.float32)
    xb = jax.random.normal(kc[1], (1, 8, 10, 24), jnp.float32)
    wc = jax.random.normal(kc[2], (32, 64, 3, 3), jnp.float32) / math.sqrt(64 * 9)
    bc = 0.05 * jax.random.normal(kc[3], (32,), jnp.float32)
    bn = _bn_init(kc[4], 32)
    got = conv3x3([xa, xb], {"w": wc, "b": bc}, bn=bn, leaky=True,
                  out_dtype=jnp.float32).astype(jnp.float32)

    xcat = jnp.concatenate([xa, xb], -1).astype(jnp.bfloat16).astype(jnp.float32)
    wref = jnp.transpose(wc, (2, 3, 1, 0)).astype(jnp.bfloat16).astype(jnp.float32)
    ref = lax.conv_general_dilated(xcat, wref, (1, 1), ((1, 1), (1, 1)),
                                   dimension_numbers=("NHWC", "HWIO", "NHWC"))
    scale = bn["gamma"] / jnp.sqrt(bn["var"] + 1e-5)
    ref = ref * scale + (bn["beta"] + scale * (bc - bn["mean"]))
    ref = jnp.where(ref >= 0.0, ref, 0.01 * ref)

    err = float(jnp.max(jnp.abs(got - ref)))
    tol = 5e-2 * (1.0 + float(jnp.max(jnp.abs(ref))))
    assert err <= tol, (err, tol)


# ---------------------------------------------------------------------------
if __name__ == "__main__":
    _check_conv3x3()

    key = jax.random.PRNGKey(0)
    x = jax.random.normal(jax.random.fold_in(key, 123), (1, 3, 64, 64), jnp.float32)  # NCHW
    params = init_params(jax.random.fold_in(key, 1))

    forward = jax.jit(nnet_forward)
    out = jax.block_until_ready(forward(params, x))

    assert out.shape == (1, 4, 64, 64), out.shape
    assert bool(jnp.all(jnp.isfinite(out)))
    print("KERNEL_OK")
</pallas_src>

<mosaic_0001>
module attributes {stable_mosaic.version = 11 : i64} {
  func.func @_conv3x3_kernel(%arg0: i32, %arg1: i32, %arg2: i32, %arg3: i32, %arg4: memref<1x132x128xbf16, #tpu.memory_space<any>>, %arg5: memref<1x132x128xbf16, #tpu.memory_space<any>>, %arg6: memref<9x128x128xbf16, #tpu.memory_space<vmem>>, %arg7: memref<1x128xf32, #tpu.memory_space<vmem>>, %arg8: memref<1x128xf32, #tpu.memory_space<vmem>>, %arg9: memref<1x96x128xf32, #tpu.memory_space<vmem>>, %arg10: memref<2x128x128xbf16, #tpu.memory_space<vmem>>, %arg11: memref<96x128xf32, #tpu.memory_space<vmem>>, %arg12: memref<2x!tpu.dma_semaphore, #tpu.memory_space<semaphore_mem>>) attributes {dimension_semantics = [#tpu.dimension_semantics<parallel>, #tpu.dimension_semantics<parallel>, #tpu.dimension_semantics<parallel>, #tpu.dimension_semantics<arbitrary>], iteration_bounds = array<i64: 1, 1, 1, 2>, scalar_prefetch = 0 : i64, scratch_operands = 3 : i64, tpu.core_type = #tpu.core_type<tc>, window_params = [{}, {}, {transform_indices = @transform_2, window_bounds = array<i64: 9, 128, 128>}, {transform_indices = @transform_3, window_bounds = array<i64: 1, 128>}, {transform_indices = @transform_4, window_bounds = array<i64: 1, 128>}, {transform_indices = @transform_5, window_bounds = array<i64: 1, 96, 128>}]} {
    %c96_i32 = arith.constant 96 : i32
    %0 = arith.muli %arg1, %c96_i32 : i32
    %1 = tpu.assume_multiple %0, 16 : i32
    %c0_i32 = arith.constant 0 : i32
    %2 = arith.cmpi eq, %arg3, %c0_i32 : i32
    %3 = arith.extui %2 : i1 to i32
    %c0_i32_0 = arith.constant 0 : i32
    %4 = arith.cmpi ne, %3, %c0_i32_0 : i32
    scf.if %4 {
      %cst_88 = arith.constant 0.000000e+00 : f32
      %109 = vector.broadcast %cst_88 : f32 to vector<96x128xf32>
      %c0_89 = arith.constant 0 : index
      %c0_90 = arith.constant 0 : index
      %110 = vector.load %arg11[%c0_89, %c0_90] : memref<96x128xf32, #tpu.memory_space<vmem>>, vector<96x128xf32>
      tpu.vector_store %arg11[%c0_89, %c0_90], %109 {strides = array<i32>} : memref<96x128xf32, #tpu.memory_space<vmem>>, vector<96x128xf32>,
      %c0_i32_91 = arith.constant 0 : i32
      %111 = arith.cmpi sge, %arg3, %c0_i32_91 : i32
      %c1_i32_92 = arith.constant 1 : i32
      %112 = arith.cmpi slt, %arg3, %c1_i32_92 : i32
      %113 = arith.andi %111, %112 : i1
      %114 = arith.extui %113 : i1 to i32
      %c0_i32_93 = arith.constant 0 : i32
      %115 = arith.cmpi ne, %114, %c0_i32_93 : i32
      scf.if %115 {
        %c0_i32_97 = arith.constant 0 : i32
        %121 = arith.subi %arg3, %c0_i32_97 : i32
        %c128_i32 = arith.constant 128 : i32
        %122 = arith.muli %121, %c128_i32 : i32
        %123 = tpu.assume_multiple %122, 128 : i32
        %c0_i32_98 = arith.constant 0 : i32
        %c0_i32_99 = arith.constant 0 : i32
        %124 = tpu.memref_slice %arg4[%arg0, %1, %123] : memref<1x132x128xbf16, #tpu.memory_space<any>> -> memref<1x128x128xbf16, #tpu.memory_space<any>>
        %125 = tpu.memref_squeeze %124 : memref<1x128x128xbf16, #tpu.memory_space<any>> -> memref<128x128xbf16, #tpu.memory_space<any>>
        %c0_i32_100 = arith.constant 0 : i32
        %c0_i32_101 = arith.constant 0 : i32
        %126 = tpu.memref_slice %arg10[%c0_i32_98, %c0_i32_100, %c0_i32_101] : memref<2x128x128xbf16, #tpu.memory_space<vmem>> -> memref<1x128x128xbf16, #tpu.memory_space<vmem>>
        %127 = tpu.memref_squeeze %126 : memref<1x128x128xbf16, #tpu.memory_space<vmem>> -> memref<128x128xbf16, #tpu.memory_space<vmem>>
        %128 = tpu.memref_slice %arg12[%c0_i32_99] : memref<2x!tpu.dma_semaphore, #tpu.memory_space<semaphore_mem>> -> memref<1x!tpu.dma_semaphore, #tpu.memory_space<semaphore_mem>>
        %129 = tpu.memref_squeeze %128 : memref<1x!tpu.dma_semaphore, #tpu.memory_space<semaphore_mem>> -> memref<!tpu.dma_semaphore, #tpu.memory_space<semaphore_mem>>
        tpu.enqueue_dma source(%125 : memref<128x128xbf16, #tpu.memory_space<any>>) target(%127 : memref<128x128xbf16, #tpu.memory_space<vmem>>) target_semaphore(%129 : memref<!tpu.dma_semaphore, #tpu.memory_space<semaphore_mem>>)
      } else {
      }
      %c1_i32_94 = arith.constant 1 : i32
      %116 = arith.cmpi sge, %arg3, %c1_i32_94 : i32
      %c2_i32_95 = arith.constant 2 : i32
      %117 = arith.cmpi slt, %arg3, %c2_i32_95 : i32
      %118 = arith.andi %116, %117 : i1
      %119 = arith.extui %118 : i1 to i32
      %c0_i32_96 = arith.constant 0 : i32
      %120 = arith.cmpi ne, %119, %c0_i32_96 : i32
      scf.if %120 {
        %c1_i32_97 = arith.constant 1 : i32
        %121 = arith.subi %arg3, %c1_i32_97 : i32
        %c128_i32 = arith.constant 128 : i32
        %122 = arith.muli %121, %c128_i32 : i32
        %123 = tpu.assume_multiple %122, 128 : i32
        %c0_i32_98 = arith.constant 0 : i32
        %c0_i32_99 = arith.constant 0 : i32
        %124 = tpu.memref_slice %arg5[%arg0, %1, %123] : memref<1x132x128xbf16, #tpu.memory_space<any>> -> memref<1x128x128xbf16, #tpu.memory_space<any>>
        %125 = tpu.memref_squeeze %124 : memref<1x128x128xbf16, #tpu.memory_space<any>> -> memref<128x128xbf16, #tpu.memory_space<any>>
        %c0_i32_100 = arith.constant 0 : i32
        %c0_i32_101 = arith.constant 0 : i32
        %126 = tpu.memref_slice %arg10[%c0_i32_98, %c0_i32_100, %c0_i32_101] : memref<2x128x128xbf16, #tpu.memory_space<vmem>> -> memref<1x128x128xbf16, #tpu.memory_space<vmem>>
        %127 = tpu.memref_squeeze %126 : memref<1x128x128xbf16, #tpu.memory_space<vmem>> -> memref<128x128xbf16, #tpu.memory_space<vmem>>
        %128 = tpu.memref_slice %arg12[%c0_i32_99] : memref<2x!tpu.dma_semaphore, #tpu.memory_space<semaphore_mem>> -> memref<1x!tpu.dma_semaphore, #tpu.memory_space<semaphore_mem>>
        %129 = tpu.memref_squeeze %128 : memref<1x!tpu.dma_semaphore, #tpu.memory_space<semaphore_mem>> -> memref<!tpu.dma_semaphore, #tpu.memory_space<semaphore_mem>>
        tpu.enqueue_dma source(%125 : memref<128x128xbf16, #tpu.memory_space<any>>) target(%127 : memref<128x128xbf16, #tpu.memory_space<vmem>>) target_semaphore(%129 : memref<!tpu.dma_semaphore, #tpu.memory_space<semaphore_mem>>)
      } else {
      }
    } else {
    }
    %c2_i32 = arith.constant 2 : i32
    %c0_i32_1 = arith.constant 0 : i32
    %5 = arith.cmpi eq, %c2_i32, %c0_i32_1 : i32
    %c1_i32 = arith.constant 1 : i32
    %6 = arith.select %5, %c1_i32, %c2_i32 : i32
    %7 = arith.remsi %arg3, %6 : i32
    %c0_i32_2 = arith.constant 0 : i32
    %8 = arith.cmpi ne, %7, %c0_i32_2 : i32
    %c0_i32_3 = arith.constant 0 : i32
    %9 = arith.cmpi slt, %7, %c0_i32_3 : i32
    %c0_i32_4 = arith.constant 0 : i32
    %10 = arith.cmpi slt, %6, %c0_i32_4 : i32
    %11 = arith.xori %9, %10 : i1
    %12 = arith.andi %11, %8 : i1
    %13 = arith.addi %7, %6 : i32
    %14 = arith.select %12, %13, %7 : i32
    %c0_i32_5 = arith.constant 0 : i32
    %c0_i32_6 = arith.constant 0 : i32
    %15 = tpu.memref_slice %arg4[%arg0, %c0_i32_5, %c0_i32_6] : memref<1x132x128xbf16, #tpu.memory_space<any>> -> memref<1x128x128xbf16, #tpu.memory_space<any>>
    %16 = tpu.memref_squeeze %15 : memref<1x128x128xbf16, #tpu.memory_space<any>> -> memref<128x128xbf16, #tpu.memory_space<any>>
    %c0_i32_7 = arith.constant 0 : i32
    %c0_i32_8 = arith.constant 0 : i32
    %17 = tpu.memref_slice %arg10[%14, %c0_i32_7, %c0_i32_8] : memref<2x128x128xbf16, #tpu.memory_space<vmem>> -> memref<1x128x128xbf16, #tpu.memory_space<vmem>>
    %18 = tpu.memref_squeeze %17 : memref<1x128x128xbf16, #tpu.memory_space<vmem>> -> memref<128x128xbf16, #tpu.memory_space<vmem>>
    %19 = tpu.memref_slice %arg12[%14] : memref<2x!tpu.dma_semaphore, #tpu.memory_space<semaphore_mem>> -> memref<1x!tpu.dma_semaphore, #tpu.memory_space<semaphore_mem>>
    %20 = tpu.memref_squeeze %19 : memref<1x!tpu.dma_semaphore, #tpu.memory_space<semaphore_mem>> -> memref<!tpu.dma_semaphore, #tpu.memory_space<semaphore_mem>>
    tpu.wait_dma2 semaphore(%20 : memref<!tpu.dma_semaphore, #tpu.memory_space<semaphore_mem>>) src(%16 : memref<128x128xbf16, #tpu.memory_space<any>>) dst(%18 : memref<128x128xbf16, #tpu.memory_space<vmem>>)
    %c1_i32_9 = arith.constant 1 : i32
    %21 = arith.addi %arg3, %c1_i32_9 : i32
    %c2_i32_10 = arith.constant 2 : i32
    %22 = arith.cmpi slt, %21, %c2_i32_10 : i32
    %23 = arith.extui %22 : i1 to i32
    %c0_i32_11 = arith.constant 0 : i32
    %24 = arith.cmpi ne, %23, %c0_i32_11 : i32
    scf.if %24 {
      %c1_i32_88 = arith.constant 1 : i32
      %109 = arith.addi %arg3, %c1_i32_88 : i32
      %c1_i32_89 = arith.constant 1 : i32
      %110 = arith.subi %c1_i32_89, %14 : i32
      %c0_i32_90 = arith.constant 0 : i32
      %111 = arith.cmpi sge, %109, %c0_i32_90 : i32
      %c1_i32_91 = arith.constant 1 : i32
      %112 = arith.cmpi slt, %109, %c1_i32_91 : i32
      %113 = arith.andi %111, %112 : i1
      %114 = arith.extui %113 : i1 to i32
      %c0_i32_92 = arith.constant 0 : i32
      %115 = arith.cmpi ne, %114, %c0_i32_92 : i32
      scf.if %115 {
        %c0_i32_96 = arith.constant 0 : i32
        %121 = arith.subi %109, %c0_i32_96 : i32
        %c128_i32 = arith.constant 128 : i32
        %122 = arith.muli %121, %c128_i32 : i32
        %123 = tpu.assume_multiple %122, 128 : i32
        %124 = tpu.memref_slice %arg4[%arg0, %1, %123] : memref<1x132x128xbf16, #tpu.memory_space<any>> -> memref<1x128x128xbf16, #tpu.memory_space<any>>
        %125 = tpu.memref_squeeze %124 : memref<1x128x128xbf16, #tpu.memory_space<any>> -> memref<128x128xbf16, #tpu.memory_space<any>>
        %c0_i32_97 = arith.constant 0 : i32
        %c0_i32_98 = arith.constant 0 : i32
        %126 = tpu.memref_slice %arg10[%110, %c0_i32_97, %c0_i32_98] : memref<2x128x128xbf16, #tpu.memory_space<vmem>> -> memref<1x128x128xbf16, #tpu.memory_space<vmem>>
        %127 = tpu.memref_squeeze %126 : memref<1x128x128xbf16, #tpu.memory_space<vmem>> -> memref<128x128xbf16, #tpu.memory_space<vmem>>
        %128 = tpu.memref_slice %arg12[%110] : memref<2x!tpu.dma_semaphore, #tpu.memory_space<semaphore_mem>> -> memref<1x!tpu.dma_semaphore, #tpu.memory_space<semaphore_mem>>
        %129 = tpu.memref_squeeze %128 : memref<1x!tpu.dma_semaphore, #tpu.memory_space<semaphore_mem>> -> memref<!tpu.dma_semaphore, #tpu.memory_space<semaphore_mem>>
        tpu.enqueue_dma source(%125 : memref<128x128xbf16, #tpu.memory_space<any>>) target(%127 : memref<128x128xbf16, #tpu.memory_space<vmem>>) target_semaphore(%129 : memref<!tpu.dma_semaphore, #tpu.memory_space<semaphore_mem>>)
      } else {
      }
      %c1_i32_93 = arith.constant 1 : i32
      %116 = arith.cmpi sge, %109, %c1_i32_93 : i32
      %c2_i32_94 = arith.constant 2 : i32
      %117 = arith.cmpi slt, %109, %c2_i32_94 : i32
      %118 = arith.andi %116, %117 : i1
      %119 = arith.extui %118 : i1 to i32
      %c0_i32_95 = arith.constant 0 : i32
      %120 = arith.cmpi ne, %119, %c0_i32_95 : i32
      scf.if %120 {
        %c1_i32_96 = arith.constant 1 : i32
        %121 = arith.subi %109, %c1_i32_96 : i32
        %c128_i32 = arith.constant 128 : i32
        %122 = arith.muli %121, %c128_i32 : i32
        %123 = tpu.assume_multiple %122, 128 : i32
        %124 = tpu.memref_slice %arg5[%arg0, %1, %123] : memref<1x132x128xbf16, #tpu.memory_space<any>> -> memref<1x128x128xbf16, #tpu.memory_space<any>>
        %125 = tpu.memref_squeeze %124 : memref<1x128x128xbf16, #tpu.memory_space<any>> -> memref<128x128xbf16, #tpu.memory_space<any>>
        %c0_i32_97 = arith.constant 0 : i32
        %c0_i32_98 = arith.constant 0 : i32
        %126 = tpu.memref_slice %arg10[%110, %c0_i32_97, %c0_i32_98] : memref<2x128x128xbf16, #tpu.memory_space<vmem>> -> memref<1x128x128xbf16, #tpu.memory_space<vmem>>
        %127 = tpu.memref_squeeze %126 : memref<1x128x128xbf16, #tpu.memory_space<vmem>> -> memref<128x128xbf16, #tpu.memory_space<vmem>>
        %128 = tpu.memref_slice %arg12[%110] : memref<2x!tpu.dma_semaphore, #tpu.memory_space<semaphore_mem>> -> memref<1x!tpu.dma_semaphore, #tpu.memory_space<semaphore_mem>>
        %129 = tpu.memref_squeeze %128 : memref<1x!tpu.dma_semaphore, #tpu.memory_space<semaphore_mem>> -> memref<!tpu.dma_semaphore, #tpu.memory_space<semaphore_mem>>
        tpu.enqueue_dma source(%125 : memref<128x128xbf16, #tpu.memory_space<any>>) target(%127 : memref<128x128xbf16, #tpu.memory_space<vmem>>) target_semaphore(%129 : memref<!tpu.dma_semaphore, #tpu.memory_space<semaphore_mem>>)
      } else {
      }
    } else {
    }
    %25 = arith.index_cast %14 : i32 to index
    %c0 = arith.constant 0 : index
    %c0_12 = arith.constant 0 : index
    %26 = vector.load %arg10[%25, %c0, %c0_12] : memref<2x128x128xbf16, #tpu.memory_space<vmem>>, vector<1x96x128xbf16>
    %27 = vector.shape_cast %26 : vector<1x96x128xbf16> to vector<96x128xbf16>
    %c0_13 = arith.constant 0 : index
    %c0_14 = arith.constant 0 : index
    %28 = vector.load %arg11[%c0_13, %c0_14] : memref<96x128xf32, #tpu.memory_space<vmem>>, vector<96x128xf32>
    %c0_15 = arith.constant 0 : index
    %c0_16 = arith.constant 0 : index
    %c0_17 = arith.constant 0 : index
    %29 = vector.load %arg6[%c0_15, %c0_16, %c0_17] : memref<9x128x128xbf16, #tpu.memory_space<vmem>>, vector<1x128x128xbf16>
    %30 = vector.shape_cast %29 : vector<1x128x128xbf16> to vector<128x128xbf16>
    %cst = arith.constant dense<0.000000e+00> : vector<96x128xf32>
    %31 = tpu.matmul %27, %30, %cst {dimension_numbers = #tpu.dot_dimension_numbers<[1], [0], [0], [1], [0, 0, 1, 1], [], []>} : vector<96x128xbf16>, vector<128x128xbf16>, vector<96x128xf32> -> vector<96x128xf32>
    %32 = arith.addf %28, %31 : vector<96x128xf32>
    %c0_18 = arith.constant 0 : index
    %c0_19 = arith.constant 0 : index
    %33 = vector.load %arg11[%c0_18, %c0_19] : memref<96x128xf32, #tpu.memory_space<vmem>>, vector<96x128xf32>
    tpu.vector_store %arg11[%c0_18, %c0_19], %32 {strides = array<i32>} : memref<96x128xf32, #tpu.memory_space<vmem>>, vector<96x128xf32>,
    %34 = arith.index_cast %14 : i32 to index
    %c1 = arith.constant 1 : index
    %c0_20 = arith.constant 0 : index
    %35 = vector.load %arg10[%34, %c1, %c0_20] : memref<2x128x128xbf16, #tpu.memory_space<vmem>>, vector<1x96x128xbf16>
    %36 = vector.shape_cast %35 : vector<1x96x128xbf16> to vector<96x128xbf16>
    %c0_21 = arith.constant 0 : index
    %c0_22 = arith.constant 0 : index
    %37 = vector.load %arg11[%c0_21, %c0_22] : memref<96x128xf32, #tpu.memory_space<vmem>>, vector<96x128xf32>
    %c1_23 = arith.constant 1 : index
    %c0_24 = arith.constant 0 : index
    %c0_25 = arith.constant 0 : index
    %38 = vector.load %arg6[%c1_23, %c0_24, %c0_25] : memref<9x128x128xbf16, #tpu.memory_space<vmem>>, vector<1x128x128xbf16>
    %39 = vector.shape_cast %38 : vector<1x128x128xbf16> to vector<128x128xbf16>
    %cst_26 = arith.constant dense<0.000000e+00> : vector<96x128xf32>
    %40 = tpu.matmul %36, %39, %cst_26 {dimension_numbers = #tpu.dot_dimension_numbers<[1], [0], [0], [1], [0, 0, 1, 1], [], []>} : vector<96x128xbf16>, vector<128x128xbf16>, vector<96x128xf32> -> vector<96x128xf32>
    %41 = arith.addf %37, %40 : vector<96x128xf32>
    %c0_27 = arith.constant 0 : index
    %c0_28 = arith.constant 0 : index
    %42 = vector.load %arg11[%c0_27, %c0_28] : memref<96x128xf32, #tpu.memory_space<vmem>>, vector<96x128xf32>
    tpu.vector_store %arg11[%c0_27, %c0_28], %41 {strides = array<i32>} : memref<96x128xf32, #tpu.memory_space<vmem>>, vector<96x128xf32>,
    %43 = arith.index_cast %14 : i32 to index
    %c2 = arith.constant 2 : index
    %c0_29 = arith.constant 0 : index
    %44 = vector.load %arg10[%43, %c2, %c0_29] : memref<2x128x128xbf16, #tpu.memory_space<vmem>>, vector<1x96x128xbf16>
    %45 = vector.shape_cast %44 : vector<1x96x128xbf16> to vector<96x128xbf16>
    %c0_30 = arith.constant 0 : index
    %c0_31 = arith.constant 0 : index
    %46 = vector.load %arg11[%c0_30, %c0_31] : memref<96x128xf32, #tpu.memory_space<vmem>>, vector<96x128xf32>
    %c2_32 = arith.constant 2 : index
    %c0_33 = arith.constant 0 : index
    %c0_34 = arith.constant 0 : index
    %47 = vector.load %arg6[%c2_32, %c0_33, %c0_34] : memref<9x128x128xbf16, #tpu.memory_space<vmem>>, vector<1x128x128xbf16>
    %48 = vector.shape_cast %47 : vector<1x128x128xbf16> to vector<128x128xbf16>
    %cst_35 = arith.constant dense<0.000000e+00> : vector<96x128xf32>
    %49 = tpu.matmul %45, %48, %cst_35 {dimension_numbers = #tpu.dot_dimension_numbers<[1], [0], [0], [1], [0, 0, 1, 1], [], []>} : vector<96x128xbf16>, vector<128x128xbf16>, vector<96x128xf32> -> vector<96x128xf32>
    %50 = arith.addf %46, %49 : vector<96x128xf32>
    %c0_36 = arith.constant 0 : index
    %c0_37 = arith.constant 0 : index
    %51 = vector.load %arg11[%c0_36, %c0_37] : memref<96x128xf32, #tpu.memory_space<vmem>>, vector<96x128xf32>
    tpu.vector_store %arg11[%c0_36, %c0_37], %50 {strides = array<i32>} : memref<96x128xf32, #tpu.memory_space<vmem>>, vector<96x128xf32>,
    %52 = arith.index_cast %14 : i32 to index
    %c12 = arith.constant 12 : index
    %c0_38 = arith.constant 0 : index
    %53 = vector.load %arg10[%52, %c12, %c0_38] : memref<2x128x128xbf16, #tpu.memory_space<vmem>>, vector<1x96x128xbf16>
    %54 = vector.shape_cast %53 : vector<1x96x128xbf16> to vector<96x128xbf16>
    %c0_39 = arith.constant 0 : index
    %c0_40 = arith.constant 0 : index
    %55 = vector.load %arg11[%c0_39, %c0_40] : memref<96x128xf32, #tpu.memory_space<vmem>>, vector<96x128xf32>
    %c3 = arith.constant 3 : index
    %c0_41 = arith.constant 0 : index
    %c0_42 = arith.constant 0 : index
    %56 = vector.load %arg6[%c3, %c0_41, %c0_42] : memref<9x128x128xbf16, #tpu.memory_space<vmem>>, vector<1x128x128xbf16>
    %57 = vector.shape_cast %56 : vector<1x128x128xbf16> to vector<128x128xbf16>
    %cst_43 = arith.constant dense<0.000000e+00> : vector<96x128xf32>
    %58 = tpu.matmul %54, %57, %cst_43 {dimension_numbers = #tpu.dot_dimension_numbers<[1], [0], [0], [1], [0, 0, 1, 1], [], []>} : vector<96x128xbf16>, vector<128x128xbf16>, vector<96x128xf32> -> vector<96x128xf32>
    %59 = arith.addf %55, %58 : vector<96x128xf32>
    %c0_44 = arith.constant 0 : index
    %c0_45 = arith.constant 0 : index
    %60 = vector.load %arg11[%c0_44, %c0_45] : memref<96x128xf32, #tpu.memory_space<vmem>>, vector<96x128xf32>
    tpu.vector_store %arg11[%c0_44, %c0_45], %59 {strides = array<i32>} : memref<96x128xf32, #tpu.memory_space<vmem>>, vector<96x128xf32>,
    %61 = arith.index_cast %14 : i32 to index
    %c13 = arith.constant 13 : index
    %c0_46 = arith.constant 0 : index
    %62 = vector.load %arg10[%61, %c13, %c0_46] : memref<2x128x128xbf16, #tpu.memory_space<vmem>>, vector<1x96x128xbf16>
    %63 = vector.shape_cast %62 : vector<1x96x128xbf16> to vector<96x128xbf16>
    %c0_47 = arith.constant 0 : index
    %c0_48 = arith.constant 0 : index
    %64 = vector.load %arg11[%c0_47, %c0_48] : memref<96x128xf32, #tpu.memory_space<vmem>>, vector<96x128xf32>
    %c4 = arith.constant 4 : index
    %c0_49 = arith.constant 0 : index
    %c0_50 = arith.constant 0 : index
    %65 = vector.load %arg6[%c4, %c0_49, %c0_50] : memref<9x128x128xbf16, #tpu.memory_space<vmem>>, vector<1x128x128xbf16>
    %66 = vector.shape_cast %65 : vector<1x128x128xbf16> to vector<128x128xbf16>
    %cst_51 = arith.constant dense<0.000000e+00> : vector<96x128xf32>
    %67 = tpu.matmul %63, %66, %cst_51 {dimension_numbers = #tpu.dot_dimension_numbers<[1], [0], [0], [1], [0, 0, 1, 1], [], []>} : vector<96x128xbf16>, vector<128x128xbf16>, vector<96x128xf32> -> vector<96x128xf32>
    %68 = arith.addf %64, %67 : vector<96x128xf32>
    %c0_52 = arith.constant 0 : index
    %c0_53 = arith.constant 0 : index
    %69 = vector.load %arg11[%c0_52, %c0_53] : memref<96x128xf32, #tpu.memory_space<vmem>>, vector<96x128xf32>
    tpu.vector_store %arg11[%c0_52, %c0_53], %68 {strides = array<i32>} : memref<96x128xf32, #tpu.memory_space<vmem>>, vector<96x128xf32>,
    %70 = arith.index_cast %14 : i32 to index
    %c14 = arith.constant 14 : index
    %c0_54 = arith.constant 0 : index
    %71 = vector.load %arg10[%70, %c14, %c0_54] : memref<2x128x128xbf16, #tpu.memory_space<vmem>>, vector<1x96x128xbf16>
    %72 = vector.shape_cast %71 : vector<1x96x128xbf16> to vector<96x128xbf16>
    %c0_55 = arith.constant 0 : index
    %c0_56 = arith.constant 0 : index
    %73 = vector.load %arg11[%c0_55, %c0_56] : memref<96x128xf32, #tpu.memory_space<vmem>>, vector<96x128xf32>
    %c5 = arith.constant 5 : index
    %c0_57 = arith.constant 0 : index
    %c0_58 = arith.constant 0 : index
    %74 = vector.load %arg6[%c5, %c0_57, %c0_58] : memref<9x128x128xbf16, #tpu.memory_space<vmem>>, vector<1x128x128xbf16>
    %75 = vector.shape_cast %74 : vector<1x128x128xbf16> to vector<128x128xbf16>
    %cst_59 = arith.constant dense<0.000000e+00> : vector<96x128xf32>
    %76 = tpu.matmul %72, %75, %cst_59 {dimension_numbers = #tpu.dot_dimension_numbers<[1], [0], [0], [1], [0, 0, 1, 1], [], []>} : vector<96x128xbf16>, vector<128x128xbf16>, vector<96x128xf32> -> vector<96x128xf32>
    %77 = arith.addf %73, %76 : vector<96x128xf32>
    %c0_60 = arith.constant 0 : index
    %c0_61 = arith.constant 0 : index
    %78 = vector.load %arg11[%c0_60, %c0_61] : memref<96x128xf32, #tpu.memory_space<vmem>>, vector<96x128xf32>
    tpu.vector_store %arg11[%c0_60, %c0_61], %77 {strides = array<i32>} : memref<96x128xf32, #tpu.memory_space<vmem>>, vector<96x128xf32>,
    %79 = arith.index_cast %14 : i32 to index
    %c24 = arith.constant 24 : index
    %c0_62 = arith.constant 0 : index
    %80 = vector.load %arg10[%79, %c24, %c0_62] : memref<2x128x128xbf16, #tpu.memory_space<vmem>>, vector<1x96x128xbf16>
    %81 = vector.shape_cast %80 : vector<1x96x128xbf16> to vector<96x128xbf16>
    %c0_63 = arith.constant 0 : index
    %c0_64 = arith.constant 0 : index
    %82 = vector.load %arg11[%c0_63, %c0_64] : memref<96x128xf32, #tpu.memory_space<vmem>>, vector<96x128xf32>
    %c6 = arith.constant 6 : index
    %c0_65 = arith.constant 0 : index
    %c0_66 = arith.constant 0 : index
    %83 = vector.load %arg6[%c6, %c0_65, %c0_66] : memref<9x128x128xbf16, #tpu.memory_space<vmem>>, vector<1x128x128xbf16>
    %84 = vector.shape_cast %83 : vector<1x128x128xbf16> to vector<128x128xbf16>
    %cst_67 = arith.constant dense<0.000000e+00> : vector<96x128xf32>
    %85 = tpu.matmul %81, %84, %cst_67 {dimension_numbers = #tpu.dot_dimension_numbers<[1], [0], [0], [1], [0, 0, 1, 1], [], []>} : vector<96x128xbf16>, vector<128x128xbf16>, vector<96x128xf32> -> vector<96x128xf32>
    %86 = arith.addf %82, %85 : vector<96x128xf32>
    %c0_68 = arith.constant 0 : index
    %c0_69 = arith.constant 0 : index
    %87 = vector.load %arg11[%c0_68, %c0_69] : memref<96x128xf32, #tpu.memory_space<vmem>>, vector<96x128xf32>
    tpu.vector_store %arg11[%c0_68, %c0_69], %86 {strides = array<i32>} : memref<96x128xf32, #tpu.memory_space<vmem>>, vector<96x128xf32>,
    %88 = arith.index_cast %14 : i32 to index
    %c25 = arith.constant 25 : index
    %c0_70 = arith.constant 0 : index
    %89 = vector.load %arg10[%88, %c25, %c0_70] : memref<2x128x128xbf16, #tpu.memory_space<vmem>>, vector<1x96x128xbf16>
    %90 = vector.shape_cast %89 : vector<1x96x128xbf16> to vector<96x128xbf16>
    %c0_71 = arith.constant 0 : index
    %c0_72 = arith.constant 0 : index
    %91 = vector.load %arg11[%c0_71, %c0_72] : memref<96x128xf32, #tpu.memory_space<vmem>>, vector<96x128xf32>
    %c7 = arith.constant 7 : index
    %c0_73 = arith.constant 0 : index
    %c0_74 = arith.constant 0 : index
    %92 = vector.load %arg6[%c7, %c0_73, %c0_74] : memref<9x128x128xbf16, #tpu.memory_space<vmem>>, vector<1x128x128xbf16>
    %93 = vector.shape_cast %92 : vector<1x128x128xbf16> to vector<128x128xbf16>
    %cst_75 = arith.constant dense<0.000000e+00> : vector<96x128xf32>
    %94 = tpu.matmul %90, %93, %cst_75 {dimension_numbers = #tpu.dot_dimension_numbers<[1], [0], [0], [1], [0, 0, 1, 1], [], []>} : vector<96x128xbf16>, vector<128x128xbf16>, vector<96x128xf32> -> vector<96x128xf32>
    %95 = arith.addf %91, %94 : vector<96x128xf32>
    %c0_76 = arith.constant 0 : index
    %c0_77 = arith.constant 0 : index
    %96 = vector.load %arg11[%c0_76, %c0_77] : memref<96x128xf32, #tpu.memory_space<vmem>>, vector<96x128xf32>
    tpu.vector_store %arg11[%c0_76, %c0_77], %95 {strides = array<i32>} : memref<96x128xf32, #tpu.memory_space<vmem>>, vector<96x128xf32>,
    %97 = arith.index_cast %14 : i32 to index
    %c26 = arith.constant 26 : index
    %c0_78 = arith.constant 0 : index
    %98 = vector.load %arg10[%97, %c26, %c0_78] : memref<2x128x128xbf16, #tpu.memory_space<vmem>>, vector<1x96x128xbf16>
    %99 = vector.shape_cast %98 : vector<1x96x128xbf16> to vector<96x128xbf16>
    %c0_79 = arith.constant 0 : index
    %c0_80 = arith.constant 0 : index
    %100 = vector.load %arg11[%c0_79, %c0_80] : memref<96x128xf32, #tpu.memory_space<vmem>>, vector<96x128xf32>
    %c8 = arith.constant 8 : index
    %c0_81 = arith.constant 0 : index
    %c0_82 = arith.constant 0 : index
    %101 = vector.load %arg6[%c8, %c0_81, %c0_82] : memref<9x128x128xbf16, #tpu.memory_space<vmem>>, vector<1x128x128xbf16>
    %102 = vector.shape_cast %101 : vector<1x128x128xbf16> to vector<128x128xbf16>
    %cst_83 = arith.constant dense<0.000000e+00> : vector<96x128xf32>
    %103 = tpu.matmul %99, %102, %cst_83 {dimension_numbers = #tpu.dot_dimension_numbers<[1], [0], [0], [1], [0, 0, 1, 1], [], []>} : vector<96x128xbf16>, vector<128x128xbf16>, vector<96x128xf32> -> vector<96x128xf32>
    %104 = arith.addf %100, %103 : vector<96x128xf32>
    %c0_84 = arith.constant 0 : index
    %c0_85 = arith.constant 0 : index
    %105 = vector.load %arg11[%c0_84, %c0_85] : memref<96x128xf32, #tpu.memory_space<vmem>>, vector<96x128xf32>
    tpu.vector_store %arg11[%c0_84, %c0_85], %104 {strides = array<i32>} : memref<96x128xf32, #tpu.memory_space<vmem>>, vector<96x128xf32>,
    %c1_i32_86 = arith.constant 1 : i32
    %106 = arith.cmpi eq, %arg3, %c1_i32_86 : i32
    %107 = arith.extui %106 : i1 to i32
    %c0_i32_87 = arith.constant 0 : i32
    %108 = arith.cmpi ne, %107, %c0_i32_87 : i32
    scf.if %108 {
      %c0_88 = arith.constant 0 : index
      %c0_89 = arith.constant 0 : index
      %109 = vector.load %arg11[%c0_88, %c0_89] : memref<96x128xf32, #tpu.memory_space<vmem>>, vector<96x128xf32>
      %c0_90 = arith.constant 0 : index
      %c0_91 = arith.constant 0 : index
      %110 = vector.load %arg7[%c0_90, %c0_91] : memref<1x128xf32, #tpu.memory_space<vmem>>, vector<1x128xf32>
      %111 = vector.broadcast %110 : vector<1x128xf32> to vector<96x128xf32>
      %112 = arith.mulf %109, %111 : vector<96x128xf32>
      %c0_92 = arith.constant 0 : index
      %c0_93 = arith.constant 0 : index
      %113 = vector.load %arg8[%c0_92, %c0_93] : memref<1x128xf32, #tpu.memory_space<vmem>>, vector<1x128xf32>
      %114 = vector.broadcast %113 : vector<1x128xf32> to vector<96x128xf32>
      %115 = arith.addf %112, %114 : vector<96x128xf32>
      %cst_94 = arith.constant 0.000000e+00 : f32
      %116 = vector.broadcast %cst_94 : f32 to vector<96x128xf32>
      %117 = arith.cmpf oge, %115, %116 : vector<96x128xf32>
      %cst_95 = arith.constant 0.00999999977 : f32
      %118 = vector.broadcast %cst_95 : f32 to vector<96x128xf32>
      %119 = arith.mulf %118, %115 : vector<96x128xf32>
      %120 = arith.select %117, %115, %119 : vector<96x128xi1>, vector<96x128xf32>
      %c0_96 = arith.constant 0 : index
      %c0_97 = arith.constant 0 : index
      %c0_98 = arith.constant 0 : index
      %121 = vector.load %arg9[%c0_96, %c0_97, %c0_98] : memref<1x96x128xf32, #tpu.memory_space<vmem>>, vector<1x96x128xf32>
      %122 = vector.shape_cast %121 : vector<1x96x128xf32> to vector<96x128xf32>
      %123 = vector.shape_cast %120 : vector<96x128xf32> to vector<1x96x128xf32>
      tpu.vector_store %arg9[%c0_96, %c0_97, %c0_98], %123 {strides = array<i32>} : memref<1x96x128xf32, #tpu.memory_space<vmem>>, vector<1x96x128xf32>,
    } else {
    }
    return
  }
  func.func @transform_2(%arg0: i32, %arg1: i32, %arg2: i32, %arg3: i32) -> (i32, i32, i32) {
    %c0_i32 = arith.constant 0 : i32
    %c0_i32_0 = arith.constant 0 : i32
    return %arg3, %c0_i32, %arg2 : i32, i32, i32
  }
  func.func @transform_3(%arg0: i32, %arg1: i32, %arg2: i32, %arg3: i32) -> (i32, i32) {
    %c0_i32 = arith.constant 0 : i32
    %c0_i32_0 = arith.constant 0 : i32
    return %c0_i32, %arg2 : i32, i32
  }
  func.func @transform_4(%arg0: i32, %arg1: i32, %arg2: i32, %arg3: i32) -> (i32, i32) {
    %c0_i32 = arith.constant 0 : i32
    %c0_i32_0 = arith.constant 0 : i32
    return %c0_i32, %arg2 : i32, i32
  }
  func.func @transform_5(%arg0: i32, %arg1: i32, %arg2: i32, %arg3: i32) -> (i32, i32, i32) {
    %c0_i32 = arith.constant 0 : i32
    return %arg0, %arg1, %arg2 : i32, i32, i32
  }
}

</mosaic_0001>

<bundles_post_ra>
// kernel: tpu_custom_call.1
= control target key start
LH: loop header
LB: loop body
LE: loop exit
PB: predicated region body
PF: predicated region fallthrough
CT: control target
= control target key end

     0   :  { %10 = vsyncpa [#allocation6], 0  ;;  %s4316_s0 = inlined_call_operand.hbm [shape: bf16[1,132,128], index: 0, kind: input, shape index: {}]   ;;  %s4317_s1 = inlined_call_operand.hbm [shape: bf16[1,132,128], index: 1, kind: input, shape index: {}]   ;;  %s4318_s2 = inlined_call_operand.hbm [shape: bf16[18,128,128], index: 2, kind: input, shape index: {}]   ;;  %s4319_s3 = inlined_call_operand.vmem [shape: f32[1,128], index: 3, kind: input, shape index: {}]   ;;  %s4320_s4 = inlined_call_operand.vmem [shape: f32[1,128], index: 4, kind: input, shape index: {}]   ;;  %s4321_s5 = inlined_call_operand.hbm [shape: f32[1,96,128], index: 5, kind: output, shape index: {}]  }
   0x1   :  { %12 = vsyncpa [#allocation6 + $0x1], 0 }
   0x2   :  { %13 = vsyncpa [#allocation7], 0  ;;  %s3791_s18 = smov 0   ;;  %s3793_s19 = smov 0  }
   0x3   :  { %s3795_s20 = smov 0   ;;  %s3797_s21 = smov 0  }
   0x4   :  { %s3799_s22 = smov 0   ;;  %s3801_s23 = smov 0  }
   0x5 LB: > { %s4322_s24 = sadd.s32 4294967295, %s3751_s23   ;;  %s34_s25 = sadd.s32 1, %s3747_s22  ;;  %s3751_s23 = sphi %s3801_s23, %s19_s23   ;;  %s3747_s22 = sphi %s3799_s22, %s4336_s22   ;;  %s3743_s21 = sphi %s3797_s21, %s4335_s21   ;;  %s3739_s20 = sphi %s3795_s20, %s4334_s20   ;;  %s3735_s19 = sphi %s3793_s19, %s4333_s19   ;;  %s3731_s18 = sphi %s3791_s18, %s4332_s18  }
   0x6   : > { %p35_p0 = scmp.ge.s32.totalorder %s34_s25, 2  ;;  %s54_s26 = sadd.s32 1, %s3739_s20 }
   0x7   : > { %p61_p1 = scmp.ne.s32.totalorder %s3739_s20, %s3735_s19  ;;  %p62_p2 = scmp.eq.s32.totalorder %s3751_s23, 0 }
   0x8   : > { %s4338_s25 = smov (%p35_p0, %s34_s25), 0  ;;  %p67_p4 = scmp.ne.s32.totalorder %s3735_s19, %s3731_s18 }
   0x9   : > { %p63_p3 = por %p62_p2, %p61_p1  ;;  %s49_s27 = ssub.s32 %s3747_s22, %s4338_s25 }
   0xa   : > { %p68_p5 = scmp.eq.s32.totalorder %s4322_s24, 0  ;;  %p52_p6 = scmp.eq.s32.totalorder %s49_s27, 0 }
   0xb   : > { %p3455_p8 = scmp.lt.s32.totalorder %s3751_s23, 2  ;;  %s185_s30 = sand.u32 1, %s3739_s20  }
   0xc   : > { %p3832_p7 = por %p68_p5, %p67_p4  ;;  %s3411_s6 = smul.u32 576, %s3747_s22 }
   0xd   : > { %s3838_s29 = scalar_select %p52_p6, %s3739_s20, %s54_s26  }
   0xe   : > { %s3428_s7 = smul.u32 576, %s185_s30  ;;  %s196_s10 = scalar_lea.hbm %s4318_s2, %s3411_s6 }
   0xf   : > { %p3445_p9 = pnand %p3455_p8, %p63_p3  ;;  %s197_s11 = sshll.u32 %s196_s10, 4  ;;  %s198_s11 = int_to_ptr.hbm [resolvable:$true] %s197_s11 }
  0x10   : > { %s189_s12 = scalar_lea.vmem [#allocation5], %s3428_s7  ;;  %s186_s14 = scalar_lea.sflag [#allocation6], %s185_s30 }
  0x11   : > { %s199_s13 = sshll.u32 %s189_s12, 4  ;;  %s3753_s15 = smov 64   ;;  %s200_s13 = int_to_ptr.vmem [resolvable:$true] %s199_s13 }
  0x12   : > { %s3754_s16 = smov 4   ;;  %p2617_p10 = scmp.ge.s32.totalorder %s3751_s23, 1 }
  0x13   : > { %3447 = dma.hbm_to_vmem [thread:$0]  (!%p3445_p9), %s198_s11, 9216, %s200_s13, %s186_s14, %s3753_s15, %s3753_s15, %s3754_s16  }
  0x14   : > { %p207_p11 = scmp.lt.s32.totalorder %s3751_s23, 3 }
  0x16   : > { %p208_p12 = pnand %p2617_p10, %p207_p11 }
  0x17   : > { %s213_s17 = sand.u32 (!%p208_p12), 1, %s3735_s19  }
  0x18   : > { %211 = sbr.rel (%p208_p12) target bundleno = 537 (0x219), region = 32  ;;  %s214_s26 = scalar_lea.sflag (!%p208_p12), [#allocation6], %s213_s17 }
  0x19   : > { %s3429_s18 = smul.u32 (!%p208_p12), 576, %s213_s17 }
  0x1b   : > { %s3848_s27 = scalar_lea.vmem (!%p208_p12), [#allocation5], %s3429_s18 }
  0x1d   : > { %3720 = dma.done.wait (%p3832_p7), %s214_s26, 9216  }
  0x1e   : > { %3722 = vsyncadd (%p3832_p7), %s214_s26, 4294958080  ;;  %p2618_p13 = scmp.ne.s32.totalorder %s3743_s21, 0 }
  0x1f   : > { %p267_p0 = scmp.ge.s32.totalorder (!%p2618_p13), %s3743_s21, 0  ;;  %p268_p1 = scmp.lt.s32.totalorder (!%p2618_p13), %s3743_s21, 1 }
  0x20   : > { %254 = sbr.rel (%p2618_p13) target bundleno = 67 (0x43), region = 40  ;;  %s2619_s30 = sshll.u32 (!%p2618_p13), %s3743_s21, 7 }
  0x21   : > { %p3858_p2 = pnand (!%p2618_p13), %p268_p1, %p267_p0  ;;  %s274_s7 = sshra.s32 (!%p2618_p13), %s2619_s30, 7 }
  0x22   : > { %s2620_s28 = sshll.u32 (!%p2618_p13), %s274_s7, 2  ;;  %s3756_s8 = smov (!%p2618_p13), [#allocation2]  }
  0x23   : > { %s3862_s9 = sshll.u32 (!%p2618_p13), %s3756_s8, 4  ;;  %s282_s12 = scalar_lea.hbm (!%p2618_p13), %s4316_s0, %s2620_s28  ;;  %s293_s9 = int_to_ptr.vmem [resolvable:$true] %s3862_s9 }
  0x24   : > { %s290_s13 = sshll.u32 (!%p2618_p13), %s282_s12, 4  ;;  %p296_p3 = scmp.ge.s32.totalorder (!%p2618_p13), %s3743_s21, 1  ;;  %s291_s13 = int_to_ptr.hbm [resolvable:$true] %s290_s13 }
  0x25   : > { %v3755_v0 = vmov 0.0   ;;  %s3547_s14 = sshra.s32 %s291_s13, 4  ;;  %p3551_p5 = pneg %p3858_p2  ;;  %s3548_s14 = int_to_ptr.hbm [resolvable:$true] %s3547_s14 }
  0x26   : > { %255 = vst [vmem:[#allocation3 + $0x30] sm:$0xff] %v3755_v0  ;;  %s3549_s15 = scalar_lea.hbm %s3548_s14, 64  ;;  %s3554_s18 = scalar_lea.hbm %s4316_s0, 68 }
  0x27   : > { %256 = vst [vmem:[#allocation3] sm:$0xff] %v3755_v0  ;;  %p3550_p4 = scmp.ne.s32.totalorder %s3548_s14, %s3549_s15  ;;  %p3555_p8 = scmp.lt.s32.totalorder %s3548_s14, %s4316_s0 }
  0x28   : > { %257 = vst [vmem:[#allocation3 + $0x58] sm:$0xff] %v3755_v0  ;;  %p3556_p9 = scmp.lt.s32.totalorder %s3554_s18, %s3549_s15 }
  0x29   : > { %258 = vst [vmem:[#allocation3 + $0x18] sm:$0xff] %v3755_v0  ;;  %p3552_p6 = pnand %p3551_p5, %p3550_p4 }
  0x2a   : > { %259 = vst [vmem:[#allocation3 + $0x50] sm:$0xff] %v3755_v0  ;;  %p3557_p10 = por %p3556_p9, %p3555_p8 }
  0x2b   : > { %260 = vst [vmem:[#allocation3 + $0x20] sm:$0xff] %v3755_v0  ;;  %p3553_p7 = pneg %p3552_p6 }
  0x2d   : > { %p3558_p11 = pnand %p3557_p10, %p3553_p7 }
  0x2f   : > { %3561 = shalt.err (!%p3558_p11)  }
  0x30   : > { %3433 = dma.hbm_to_vmem [thread:$0]  (!%p3858_p2), %s291_s13, 1024, %s293_s9, [#allocation4]  ;;  %261 = vst [vmem:[#allocation3 + $0x8] sm:$0xff] %v3755_v0 }
  0x31   : > { %262 = vst [vmem:[#allocation3 + $0x38] sm:$0xff] %v3755_v0  ;;  %p297_p12 = scmp.lt.s32.totalorder %s3743_s21, 2  ;;  %s2621_s7 = sadd.s32 4294967295, %s3743_s21 }
  0x32   : > { %263 = vst [vmem:[#allocation3 + $0x28] sm:$0xff] %v3755_v0  ;;  %s2622_s28 = sshll.u32 %s2621_s7, 7  ;;  %s3584_s26 = scalar_lea.hbm %s4317_s1, 68 }
  0x33   : > { %264 = vst [vmem:[#allocation3 + $0x48] sm:$0xff] %v3755_v0  ;;  %p3885_p13 = pnand %p297_p12, %p296_p3  ;;  %s304_s6 = sshra.s32 %s2622_s28, 7 }
  0x34   : > { %265 = vst [vmem:[#allocation3 + $0x10] sm:$0xff] %v3755_v0  ;;  %s2623_s10 = sshll.u32 %s304_s6, 2 }
  0x35   : > { %266 = vst [vmem:[#allocation3 + $0x40] sm:$0xff] %v3755_v0  ;;  %s312_s13 = scalar_lea.hbm %s4317_s1, %s2623_s10  ;;  %p3581_p1 = pneg %p3885_p13 }
  0x36   : > { %s320_s14 = sshll.u32 %s312_s13, 4  ;;  %s321_s14 = int_to_ptr.hbm [resolvable:$true] %s320_s14 }
  0x37   : > { %s3577_s15 = sshra.s32 %s321_s14, 4  ;;  %s3578_s15 = int_to_ptr.hbm [resolvable:$true] %s3577_s15 }
  0x38   : > { %s3579_s16 = scalar_lea.hbm %s3578_s15, 64  ;;  %p3585_p4 = scmp.lt.s32.totalorder %s3578_s15, %s4317_s1 }
  0x39   : > { %p3580_p0 = scmp.ne.s32.totalorder %s3578_s15, %s3579_s16  ;;  %p3586_p5 = scmp.lt.s32.totalorder %s3584_s26, %s3579_s16 }
  0x3b   : > { %p3582_p2 = pnand %p3581_p1, %p3580_p0  ;;  %p3587_p6 = por %p3586_p5, %p3585_p4 }
  0x3d   : > { %p3583_p3 = pneg %p3582_p2 }
  0x3f   : > { %p3588_p7 = pnand %p3587_p6, %p3583_p3 }
  0x41   : > { %3591 = shalt.err (!%p3588_p7)  }
  0x42   : > { %3435 = dma.hbm_to_vmem [thread:$0]  (!%p3885_p13), %s321_s14, 1024, %s293_s9, [#allocation4] }
  0x43 PF: > { %p326_p8 = scmp.lt.s32.totalorder %s3743_s21, 0  ;;  %s327_s28 = ssub.s32 0, %s3743_s21 }
  0x44   : > { %s2624_s6 = smin.u32 %s3743_s21, %s327_s28 }
  0x45   : > { %s329_s10 = sand.u32 1, %s2624_s6  }
  0x46   : > { %s330_s11 = ssub.s32 0, %s329_s10 }
  0x47   : > { %s4340_s11 = smov (!%p326_p8, %s330_s11), %s329_s10 }
  0x48   : > { %p2626_p9 = scmp.lt.s32.totalorder %s4340_s11, 0  ;;  %s336_s12 = sadd.s32 2, %s4340_s11 }
  0x4a   : > { %s4342_s12 = smov (!%p2626_p9, %s336_s12), %s4340_s11 }
  0x4b   : > { %s3280_s8 = sshll.u32 %s4342_s12, 6  ;;  %s341_s9 = scalar_lea.sflag [#allocation4], %s4342_s12 }
  0x4c   : > { %s3910_s13 = scalar_lea.vmem [#allocation2], %s3280_s8 }
  0x4d   : > { %3723 = dma.done.wait %s341_s9, 1024 }
  0x4e   : > { %3724 = vsyncadd %s341_s9, 4294966272  ;;  %s346_s14 = sadd.s32 1, %s3743_s21  ;;  %s351_s15 = ssub.s32 1, %s4342_s12  ;;  %v3298_v1 = vld [vmem:[%s3848_s27 + $0x38] sm:$0xff]  ;;  %v3297_v2 = vld [vmem:[%s3848_s27 + $0x30] sm:$0xff] }
  0x4f   : > { %p3456_p10 = scmp.lt.s32.totalorder %s346_s14, 2  ;;  %p352_p11 = scmp.ge.s32.totalorder %s346_s14, 0  ;;  %3412 = vmatpush.bf16.msra.mxu1 %v3298_v1  ;;  %3413 = vmatpush.bf16.msra.mxu2 %v3298_v1  ;;  %v3340_v3 = vld [vmem:[%s3848_s27 + $0xf8] sm:$0xff]  ;;  %v3296_v4 = vld [vmem:[%s3848_s27 + $0x28] sm:$0xff] }
  0x50   : > { %p353_p12 = scmp.lt.s32.totalorder %s346_s14, 1  ;;  %s3281_s16 = sshll.u32 %s3743_s21, 7  ;;  %540 = vmatpush.bf16.msra.mxu0 %v3298_v1 }
  0x51   : > { %s3283_s17 = sshll.u32 %s351_s15, 6  ;;  %s3282_s26 = sadd.s32 128, %s3281_s16 }
  0x52   : > { %p3918_p13 = pnand %p353_p12, %p352_p11  ;;  %s359_s30 = sshra.s32 %s3282_s26, 7 }
  0x53   : > { %s2631_s7 = sshll.u32 %s359_s30, 2  ;;  %s370_s8 = scalar_lea.vmem [#allocation2], %s3283_s17  ;;  %3414 = vmatpush.bf16.msra.mxu1 %v3297_v2  ;;  %3415 = vmatpush.bf16.msra.mxu2 %v3297_v2 }
  0x54   : > { %p3436_p0 = pneg %p3918_p13  ;;  %s367_s10 = scalar_lea.hbm %s4316_s0, %s2631_s7 }
  0x55   : > { %s3928_s11 = sshll.u32 %s367_s10, 4  ;;  %s381_s9 = sshll.u32 %s370_s8, 4  ;;  %s380_s11 = int_to_ptr.hbm [resolvable:$true] %s3928_s11  ;;  %s3932_s9 = int_to_ptr.vmem [resolvable:$true] %s381_s9 }
  0x56   : > { %p3935_p1 = pnand %p3456_p10, %p3436_p0  ;;  %p3457_p2 = scmp.ge.s32.totalorder %s346_s14, 1 }
  0x57   : > { %s3939_s26 = sshra.s32 %s3281_s16, 7  ;;  %s3950_s30 = scalar_lea.sflag [#allocation4], %s351_s15 }
  0x58   : > { %p3943_p3 = pnand %p3457_p2, %p3456_p10  ;;  %s3607_s7 = sshra.s32 %s380_s11, 4  ;;  %s3608_s7 = int_to_ptr.hbm [resolvable:$true] %s3607_s7 }
  0x59   : > { %s3609_s28 = scalar_lea.hbm %s3608_s7, 64  ;;  %p3611_p5 = pneg %p3935_p1 }
  0x5a   : > { %p3610_p4 = scmp.ne.s32.totalorder %s3608_s7, %s3609_s28  ;;  %s3614_s6 = scalar_lea.hbm %s4316_s0, 68 }
  0x5b   : > { %p3615_p8 = scmp.lt.s32.totalorder %s3608_s7, %s4316_s0  ;;  %p3616_p9 = scmp.lt.s32.totalorder %s3614_s6, %s3609_s28 }
  0x5c   : > { %p3612_p6 = pnand %p3611_p5, %p3610_p4 }
  0x5d   : > { %p3617_p10 = por %p3616_p9, %p3615_p8 }
  0x5e   : > { %p3613_p7 = pneg %p3612_p6 }
  0x60   : > { %p3618_p11 = pnand %p3617_p10, %p3613_p7 }
  0x62   : > { %3621 = shalt.err (!%p3618_p11)  }
  0x63   : > { %s3622_s12 = sshra.s32 %s3932_s9, 4  ;;  %s3757_s7 = smov [#allocation2]   ;;  %s3623_s12 = int_to_ptr.vmem [resolvable:$true] %s3622_s12 }
  0x64   : > { %s3624_s15 = scalar_lea.vmem %s3623_s12, 64  ;;  %s3629_s28 = scalar_lea.vmem %s3757_s7, 128 }
  0x65   : > { %p3966_p12 = scmp.ne.s32.totalorder %s3623_s12, %s3624_s15  ;;  %p3630_p2 = scmp.lt.s32.totalorder %s3623_s12, [#allocation2] }
  0x66   : > { %p3631_p4 = scmp.lt.s32.totalorder %s3629_s28, %s3624_s15 }
  0x67   : > { %p3627_p13 = pnand %p3966_p12, %p3611_p5 }
  0x68   : > { %p3975_p6 = por %p3631_p4, %p3630_p2 }
  0x69   : > { %p3628_p0 = pneg %p3627_p13 }
  0x6b   : > { %p3633_p7 = pnand %p3975_p6, %p3628_p0 }
  0x6d   : > { %3636 = shalt.err (!%p3633_p7)  }
  0x6e   : > { %3451 = dma.hbm_to_vmem [thread:$0]  (!%p3935_p1), %s380_s11, 1024, %s3932_s9, %s3950_s30  ;;  %541 = vmatpush.bf16.msra.mxu0 %v3297_v2  ;;  %1197 = vmatpush.bf16.msra.mxu3 %v3340_v3  ;;  %v3339_v5 = vld [vmem:[%s3848_s27 + $0xf0] sm:$0xff]  ;;  %v3295_v6 = vld [vmem:[%s3848_s27 + $0x20] sm:$0xff] }
  0x6f   : > { %s2636_s16 = sshll.u32 %s3939_s26, 2  ;;  %3416 = vmatpush.bf16.msra.mxu1 %v3296_v4  ;;  %3417 = vmatpush.bf16.msra.mxu2 %v3296_v4  ;;  %p3641_p8 = pneg %p3943_p3 }
  0x70   : > { %s398_s8 = scalar_lea.hbm %s4317_s1, %s2636_s16  ;;  %s3644_s7 = scalar_lea.hbm %s4317_s1, 68 }
  0x71   : > { %s410_s12 = sshll.u32 %s398_s8, 4  ;;  %s411_s12 = int_to_ptr.hbm [resolvable:$true] %s410_s12 }
  0x72   : > { %s3637_s18 = sshra.s32 %s411_s12, 4  ;;  %s3638_s18 = int_to_ptr.hbm [resolvable:$true] %s3637_s18 }
  0x73   : > { %s3639_s15 = scalar_lea.hbm %s3638_s18, 64  ;;  %p3645_p10 = scmp.lt.s32.totalorder %s3638_s18, %s4317_s1 }
  0x74   : > { %p3640_p5 = scmp.ne.s32.totalorder %s3638_s18, %s3639_s15  ;;  %p3646_p11 = scmp.lt.s32.totalorder %s3644_s7, %s3639_s15 }
  0x76   : > { %p3642_p1 = pnand %p3641_p8, %p3640_p5  ;;  %p3647_p13 = por %p3646_p11, %p3645_p10 }
  0x78   : > { %p3643_p9 = pneg %p3642_p1 }
  0x7a   : > { %p3648_p0 = pnand %p3647_p13, %p3643_p9 }
  0x7c   : > { %3651 = shalt.err (!%p3648_p0)  }
  0x7d   : > { %p3657_p2 = pnand %p3641_p8, %p3966_p12 }
  0x7f   : > { %p3658_p4 = pneg %p3657_p2 }
  0x81   : > { %p3663_p7 = pnand %p3658_p4, %p3975_p6 }
  0x83   : > { %3666 = shalt.err (!%p3663_p7)  }
  0x84   : > { %3454 = dma.hbm_to_vmem [thread:$0]  (!%p3943_p3), %s411_s12, 1024, %s3932_s9, %s3950_s30  ;;  %542 = vmatpush.bf16.msra.mxu0 %v3296_v4  ;;  %1198 = vmatpush.bf16.msra.mxu3 %v3339_v5  ;;  %v3338_v7 = vld [vmem:[%s3848_s27 + $0xe8] sm:$0xff]  ;;  %v3294_v8 = vld [vmem:[%s3848_s27 + $0x18] sm:$0xff]  ;;  %v3337_v9 = vld [vmem:[%s3848_s27 + $0xe0] sm:$0xff]  ;;  %vm1129_vm0 = vcmask 1045504   ;;  %vm923_vm2 = vcmask 1046528  }
  0x85   : > { %3418 = vmatpush.bf16.msra.mxu1 %v3295_v6  ;;  %3419 = vmatpush.bf16.msra.mxu2 %v3295_v6  ;;  %v3293_v10 = vld [vmem:[%s3848_s27 + $0x10] sm:$0xff]  ;;  %v3336_v11 = vld [vmem:[%s3848_s27 + $0xd8] sm:$0xff]  ;;  %v3292_v12 = vld [vmem:[%s3848_s27 + $0x8] sm:$0xff]  ;;  %vm678_vm1 = vsmask.f32 7424  ;;  %vm1590_vm4 = vcmask 1044480  }
  0x86   : > { %v3335_v13 = vld [vmem:[%s3848_s27 + $0xd0] sm:$0xff]  ;;  %v3291_v14 = vld [vmem:[%s3848_s27] sm:$0xff]  ;;  %v3327_v16 = vld [vmem:[%s3910_s13 + $0x4] sm:$0xf0]  ;;  %vm1335_vm3 = vsmask.f32 5376 }
  0x87   : > { %v2857_v15 = vld [vmem:[%s3910_s13 + $0x4] sm:$0xc]  ;;  %v3312_v17 = vld [vmem:[%s3848_s27 + $0x78] sm:$0xff]  ;;  %v3334_v19 = vld [vmem:[%s3848_s27 + $0xc8] sm:$0xff]  ;;  %p3271_p3 = scmp.ne.s32.totalorder %s3743_s21, 1 }
  0x88   : > { %543 = vmatpush.bf16.msra.mxu0 %v3295_v6  ;;  %1199 = vmatpush.bf16.msra.mxu3 %v3338_v7  ;;  %v3326_v18 = vld [vmem:[%s3848_s27 + $0xb8] sm:$0xff]  ;;  %v3287_v20 = vld [vmem:[%s3910_s13 + $0x10] sm:$0xff]  ;;  %v3289_v21 = vld [vmem:[%s3910_s13 + $0x20] sm:$0xff]  ;;  %v2858_v23 = vor.u32 %v3327_v16, %v2857_v15 }
  0x89   : > { %3420 = vmatpush.bf16.msra.mxu1 %v3294_v8  ;;  %3421 = vmatpush.bf16.msra.mxu2 %v3294_v8  ;;  %v4025_v22 = vld [vmem:[%s3910_s13 + $0xc] sm:$0xff]  ;;  %v3354_v24 = vld [vmem:[%s3848_s27 + $0x138] sm:$0xff]  ;;  %v3285_v27 = vld [vmem:[%s3910_s13] sm:$0xff] }
  0x8a   : > { %v3311_v25 = vld [vmem:[%s3848_s27 + $0x70] sm:$0xff]  ;;  %v3333_v28 = vld [vmem:[%s3848_s27 + $0xc0] sm:$0xff]  ;;  %v1130_v29 = vrot.slane %v2858_v23, 2  ;;  %v1131_v30 = vrot.slane %v4025_v22, 2  ;;  %v3396_v32 = vld [vmem:[%s3848_s27 + $0x1f8] sm:$0xff] }
  0x8b   : > { %v3325_v26 = vld [vmem:[%s3848_s27 + $0xb0] sm:$0xff]  ;;  %v3310_v33 = vld [vmem:[%s3848_s27 + $0x68] sm:$0xff]  ;;  %v3309_v37 = vld [vmem:[%s3848_s27 + $0x60] sm:$0xff] }
  0x8c   : > { %544 = vmatpush.bf16.msra.mxu0 %v3294_v8  ;;  %1200 = vmatpush.bf16.msra.mxu3 %v3337_v9  ;;  %v3353_v31 = vld [vmem:[%s3848_s27 + $0x130] sm:$0xff]  ;;  %v3324_v34 = vld [vmem:[%s3848_s27 + $0xa8] sm:$0xff]  ;;  %v1132_v35 = vsel %vm1129_vm0, %v1130_v29, %v1131_v30  ;;  %v3323_v38 = vld [vmem:[%s3848_s27 + $0xa0] sm:$0xff] }
  0x8d   : > { %3422 = vmatpush.bf16.msra.mxu1 %v3293_v10  ;;  %3423 = vmatpush.bf16.msra.mxu2 %v3293_v10  ;;  %v3352_v36 = vld [vmem:[%s3848_s27 + $0x128] sm:$0xff]  ;;  %v3351_v39 = vld [vmem:[%s3848_s27 + $0x120] sm:$0xff]  ;;  %v3308_v40 = vld [vmem:[%s3848_s27 + $0x58] sm:$0xff] }
  0x8e   : > { %v3322_v41 = vld [vmem:[%s3848_s27 + $0x98] sm:$0xff]  ;;  %v3290_v43 = vld [vmem:[%s3910_s13 + $0x28] sm:$0xff]  ;;  %v2929_v45 = vld [vmem:[%s3910_s13 + $0x4] sm:$0xc] }
  0x8f   : > { %v3288_v42 = vld [vmem:[%s3910_s13 + $0x18] sm:$0xff]  ;;  %v3341_v46 = vld [vmem:[%s3910_s13 + $0x4] sm:$0xf0]  ;;  %v3299_v47 = vld [vmem:[%s3910_s13] sm:$0xff] }
  0x90   : > { %545 = vmatpush.bf16.msra.mxu0 %v3293_v10  ;;  %1201 = vmatpush.bf16.msra.mxu3 %v3336_v11  ;;  %v4047_v44 = vld [vmem:[%s3910_s13 + $0x14] sm:$0xff]  ;;  %v3286_v51 = vld [vmem:[%s3910_s13 + $0x8] sm:$0xff]  ;;  %v2930_v52 = vor.u32 %v3341_v46, %v2929_v45  ;;  %v682_v58 = vshll.u32 %v3299_v47, 16  ;;  %v2785_v61 = vld [vmem:[%s3910_s13] sm:$0xe]  ;;  %v680_v4 = vshrl.u32 %v3299_v47, 16 }
  0x91   : > { %3424 = vmatpush.bf16.msra.mxu1 %v3292_v12  ;;  %3425 = vmatpush.bf16.msra.mxu2 %v3292_v12  ;;  %v3350_v48 = vld [vmem:[%s3848_s27 + $0x118] sm:$0xff]  ;;  %v3307_v49 = vld [vmem:[%s3848_s27 + $0x50] sm:$0xff]  ;;  %v1133_v53 = vrot.slane %v4047_v44, 2  ;;  %v3306_v56 = vld [vmem:[%s3848_s27 + $0x48] sm:$0xff] }
  0x92   : > { %v3321_v50 = vld [vmem:[%s3848_s27 + $0x90] sm:$0xff]  ;;  %v4061_v57 = vld [vmem:[%s3910_s13 + $0x8] sm:$0xff]  ;;  %v3313_v62 = vld [vmem:[%s3910_s13] sm:$0xf0]  ;;  %v1337_v63 = vshrl.u32 %v2930_v52, 16  ;;  %v1340_v1 = vshll.u32 %v2930_v52, 16 }
  0x93   : > { %v3342_v54 = vld [vmem:[%s3910_s13 + $0xc] sm:$0xff]  ;;  %v1134_v0 = vsel %vm1129_vm0, %v1131_v30, %v1133_v53  ;;  %v684_v5 = vrot.slane %v682_v58, 1  ;;  %v687_v6 = vshll.u32 %v4061_v57, 16  ;;  %v2786_v8 = vor.u32 %v3313_v62, %v2785_v61  ;;  %v3305_v10 = vld [vmem:[%s3848_s27 + $0x40] sm:$0xff]  ;;  %v3410_v23 = vld [vmem:[%s3848_s27 + $0x238] sm:$0xff] }
  0x94   : > { %546 = vmatpush.bf16.msra.mxu0 %v3292_v12  ;;  %1202 = vmatpush.bf16.msra.mxu3 %v3335_v13  ;;  %v3395_v55 = vld [vmem:[%s3848_s27 + $0x1f0] sm:$0xff]  ;;  %v3320_v60 = vld [vmem:[%s3848_s27 + $0x88] sm:$0xff]  ;;  %v1345_v2 = vshrl.u32 %v3342_v54, 16  ;;  %v1348_v3 = vshll.u32 %v3342_v54, 16  ;;  %v3319_v11 = vld [vmem:[%s3848_s27 + $0x80] sm:$0xff]  ;;  %v1342_v15 = vrot.slane %v1340_v1, 3 }
  0x95   : > { %3426 = vmatpush.bf16.msra.mxu1 %v3291_v14  ;;  %3427 = vmatpush.bf16.msra.mxu2 %v3291_v14  ;;  %v3349_v59 = vld [vmem:[%s3848_s27 + $0x110] sm:$0xff]  ;;  %v4072_v7 = vld [vmem:[%s3910_s13 + $0x8] sm:$0xff]  ;;  %v3368_v12 = vld [vmem:[%s3848_s27 + $0x178] sm:$0xff]  ;;  %v691_v45 = vshrl.u32 %v4061_v57, 16 }
  0x96   : > { %v3348_v9 = vld [vmem:[%s3848_s27 + $0x108] sm:$0xff]  ;;  %v3382_v13 = vld [vmem:[%s3848_s27 + $0x1b8] sm:$0xff]  ;;  %v1347_v16 = vrot.slane %v1345_v2, 2  ;;  %v3347_v22 = vld [vmem:[%s3848_s27 + $0x100] sm:$0xff] }
  0x97   : > { %v3315_v47 = vld [vmem:[%s3910_s13 + $0x10] sm:$0xff]  ;;  %v3364_v58 = vld [vmem:[%s3848_s27 + $0x158] sm:$0xff] }
  0x98   : > { %547 = vmatpush.bf16.msra.mxu0 %v3291_v14  ;;  %1203 = vmatpush.bf16.msra.mxu3 %v3334_v19  ;;  %v1339_v14 = vrot.slane %v1337_v63, 2  ;;  %v689_v19 = vrot.slane %v687_v6, 1  ;;  %v3302_v62 = vld [vmem:[%s3910_s13 + $0x18] sm:$0xff]  ;;  %v3408_v63 = vld [vmem:[%s3848_s27 + $0x228] sm:$0xff] }
  0x99   : > { %785 = vmatpush.bf16.msrb.mxu1 %v3312_v17  ;;  %991 = vmatpush.bf16.msrb.mxu2 %v3326_v18  ;;  %v1350_v17 = vrot.slane %v1348_v3, 3  ;;  %v685_v18 = vor.u32 %v684_v5, %v680_v4  ;;  %v3392_v1 = vld [vmem:[%s3848_s27 + $0x1d8] sm:$0xff]  ;;  %v703_v6 = vshll.u32 %v3302_v62, 16 }
  0x9a   : > { %558 = vmatmul.bf16.vlgmr.msra.gmra.mxu1 %v3287_v20  ;;  %568 = vmatmul.bf16.vlgmr.msra.gmra.mxu2 %v3289_v21  ;;  %v924_v20 = vrot.slane %v2786_v8, 1  ;;  %v925_v21 = vrot.slane %v4072_v7, 1  ;;  %v693_v44 = vor.u32 %v691_v45, %v689_v19  ;;  %v3316_v7 = vld [vmem:[%s3910_s13 + $0x18] sm:$0xff]  ;;  %v3346_v45 = vld [vmem:[%s3910_s13 + $0x2c] sm:$0xff] }
  0x9b   : > { %548 = vmatmul.bf16.vlgmr.msra.gmra.mxu0 %v3285_v27  ;;  %v1351_v27 = vor.u32 %v1350_v17, %v1347_v16  ;;  %v690_v29 = vsel %vm678_vm1, %v685_v18, %v689_v19  ;;  %v3345_v17 = vld [vmem:[%s3910_s13 + $0x24] sm:$0xff]  ;;  %v3377_v19 = vld [vmem:[%s3848_s27 + $0x190] sm:$0xff] }
  0x9c   : > { %1452 = vmatpush.bf16.msrb.mxu0 %v3354_v24  ;;  %1204 = vmatpush.bf16.msra.mxu3 %v3333_v28  ;;  %v3367_v24 = vld [vmem:[%s3848_s27 + $0x170] sm:$0xff]  ;;  %v3330_v28 = vld [vmem:[%s3910_s13 + $0x1c] sm:$0xff]  ;;  %v926_v30 = vsel %vm923_vm2, %v924_v20, %v925_v21 }
  0x9d   : > { %786 = vmatpush.bf16.msrb.mxu1 %v3311_v25  ;;  %992 = vmatpush.bf16.msrb.mxu2 %v3325_v26  ;;  %v3381_v25 = vld [vmem:[%s3848_s27 + $0x1b0] sm:$0xff]  ;;  %v1343_v26 = vor.u32 %v1342_v15, %v1339_v14  ;;  %v3407_v20 = vld [vmem:[%s3848_s27 + $0x220] sm:$0xff] }
  0x9e   : > { %v3332_v14 = vld [vmem:[%s3910_s13 + $0x2c] sm:$0xff] }
  0x9f   : > { %1205 = vmatmul.bf16.vlgmr.msra.gmra.mxu3 %v1132_v35  ;;  %v3343_v35 = vld [vmem:[%s3910_s13 + $0x14] sm:$0xff] }
  0xa0   : > { %2090 = vmatpush.bf16.msrb.mxu3 %v3396_v32  ;;  %1453 = vmatpush.bf16.msrb.mxu0 %v3353_v31  ;;  %v3366_v31 = vld [vmem:[%s3848_s27 + $0x168] sm:$0xff]  ;;  %v1352_v32 = vsel %vm1335_vm3, %v1343_v26, %v1351_v27  ;;  %v3406_v26 = vld [vmem:[%s3848_s27 + $0x218] sm:$0xff] }
  0xa1   : > { %787 = vmatpush.bf16.msrb.mxu1 %v3310_v33  ;;  %993 = vmatpush.bf16.msrb.mxu2 %v3324_v34  ;;  %v3380_v33 = vld [vmem:[%s3848_s27 + $0x1a8] sm:$0xff]  ;;  %v1135_v34 = vrot.slane %v3330_v28, 2  ;;  %v1372_v28 = vshrl.u32 %v3345_v17, 16 }
  0xa4   : > { %1454 = vmatpush.bf16.msrb.mxu0 %v3352_v36  ;;  %2091 = vmatpush.bf16.msrb.mxu3 %v3395_v55  ;;  %v3394_v36 = vld [vmem:[%s3848_s27 + $0x1e8] sm:$0xff] }
  0xa5   : > { %788 = vmatpush.bf16.msrb.mxu1 %v3309_v37  ;;  %994 = vmatpush.bf16.msrb.mxu2 %v3323_v38  ;;  %v3301_v37 = vld [vmem:[%s3910_s13 + $0x10] sm:$0xff] }
  0xa6   : > { %v3409_v38 = vld [vmem:[%s3848_s27 + $0x230] sm:$0xff]  ;;  %v695_v46 = vshll.u32 %v3301_v37, 16  ;;  %v699_v5 = vshrl.u32 %v3301_v37, 16 }
  0xa8   : > { %1455 = vmatpush.bf16.msrb.mxu0 %v3351_v39  ;;  %2092 = vmatpush.bf16.msrb.mxu3 %v3394_v36  ;;  %v3365_v39 = vld [vmem:[%s3848_s27 + $0x160] sm:$0xff] }
  0xa9   : > { %789 = vmatpush.bf16.msrb.mxu1 %v3308_v40  ;;  %995 = vmatpush.bf16.msrb.mxu2 %v3322_v41  ;;  %v1136_v40 = vsel %vm1129_vm0, %v1133_v53, %v1135_v34  ;;  %v1354_v41 = vshrl.u32 %v3343_v35, 16  ;;  %v3331_v53 = vld [vmem:[%s3910_s13 + $0x24] sm:$0xff] }
  0xaa   : > { %563 = vmatmul.bf16.gmra.mxu1 %v3288_v42  ;;  %573 = vmatmul.bf16.gmra.mxu2 %v3290_v43  ;;  %v1357_v42 = vshll.u32 %v3343_v35, 16  ;;  %v3379_v43 = vld [vmem:[%s3848_s27 + $0x1a0] sm:$0xff]  ;;  %v1137_v61 = vrot.slane %v3331_v53, 2  ;;  %v1384_v53 = vshll.u32 %v3346_v45, 16 }
  0xab   : > { %553 = vmatmul.bf16.gmra.mxu0 %v3286_v51  ;;  %v927_v51 = vrot.slane %v3315_v47, 1  ;;  %v3361_v47 = vld [vmem:[%s3848_s27 + $0x140] sm:$0xff] }
  0xac   : > { %1456 = vmatpush.bf16.msrb.mxu0 %v3350_v48  ;;  %v1356_v48 = vrot.slane %v1354_v41, 2  ;;  %v1138_v2 = vsel %vm1129_vm0, %v1135_v34, %v1137_v61  ;;  %v1374_v34 = vrot.slane %v1372_v28, 2 }
  0xad   : > { %790 = vmatpush.bf16.msrb.mxu1 %v3307_v49  ;;  %996 = vmatpush.bf16.msrb.mxu2 %v3321_v50  ;;  %v1359_v49 = vrot.slane %v1357_v42, 3  ;;  %v697_v50 = vrot.slane %v695_v46, 1  ;;  %v928_v55 = vsel %vm923_vm2, %v925_v21, %v927_v51  ;;  %v1139_v21 = vrot.slane %v3332_v14, 2  ;;  %v860_v14 = vld [vmem:[%s3910_s13 + $0x30] sm:$0x1] }
  0xaf   : > { %1210 = vmatmul.bf16.gmra.mxu3 %v1134_v0  ;;  %v1360_v52 = vor.u32 %v1359_v49, %v1356_v48  ;;  %v698_v54 = vsel %vm678_vm1, %v693_v44, %v697_v50  ;;  %v3363_v0 = vld [vmem:[%s3848_s27 + $0x150] sm:$0xff]  ;;  %v3390_v49 = vld [vmem:[%s3848_s27 + $0x1c8] sm:$0xff]  ;;  %v3375_v44 = vld [vmem:[%s3848_s27 + $0x180] sm:$0xff] }
  0xb0   : > { %1457 = vmatpush.bf16.msrb.mxu0 %v3349_v59  ;;  %v3393_v59 = vld [vmem:[%s3848_s27 + $0x1e0] sm:$0xff] }
  0xb1   : > { %791 = vmatpush.bf16.msrb.mxu1 %v3306_v56  ;;  %997 = vmatpush.bf16.msrb.mxu2 %v3320_v60  ;;  %v3344_v56 = vld [vmem:[%s3910_s13 + $0x1c] sm:$0xff]  ;;  %v1361_v57 = vsel %vm1335_vm3, %v1351_v27, %v1360_v52  ;;  %v1140_v27 = vsel %vm1129_vm0, %v1137_v61, %v1139_v21  ;;  %v1386_v61 = vrot.slane %v1384_v53, 3 }
  0xb2   : > { %v3378_v60 = vld [vmem:[%s3848_s27 + $0x198] sm:$0xff]  ;;  %2093 = vmatpush.bf16.msrb.mxu3 %v3393_v59  ;;  %v1363_v3 = vshrl.u32 %v3344_v56, 16  ;;  %v1366_v4 = vshll.u32 %v3344_v56, 16  ;;  %v3389_v59 = vld [vmem:[%s3848_s27 + $0x1c0] sm:$0xff] }
  0xb4   : > { %1458 = vmatpush.bf16.msrb.mxu0 %v3348_v9  ;;  %v1365_v8 = vrot.slane %v1363_v3, 2  ;;  %v1368_v9 = vrot.slane %v1366_v4, 3  ;;  %v1272_v3 = vld [vmem:[%s3910_s13 + $0x34] sm:$0x7]  ;;  %v615_v4 = vld [vmem:[%s3910_s13 + $0x30] sm:$0x1] }
  0xb5   : > { %792 = vmatpush.bf16.msrb.mxu1 %v3305_v10  ;;  %998 = vmatpush.bf16.msrb.mxu2 %v3319_v11  ;;  %v701_v10 = vor.u32 %v699_v5, %v697_v50  ;;  %v705_v11 = vrot.slane %v703_v6, 1  ;;  %v3304_v50 = vld [vmem:[%s3910_s13 + $0x28] sm:$0xff] }
  0xb6   : > { %2094 = vmatpush.bf16.msrb.mxu3 %v3392_v1  ;;  %v3404_v5 = vld [vmem:[%s3848_s27 + $0x208] sm:$0xff] }
  0xb7   : > { %v706_v15 = vsel %vm678_vm1, %v701_v10, %v705_v11 }
  0xb8   : > { %1459 = vmatpush.bf16.msrb.mxu0 %v3347_v22  ;;  %v3362_v22 = vld [vmem:[%s3848_s27 + $0x148] sm:$0xff] }
  0xb9   : > { %1658 = vmatpush.bf16.msra.mxu1 %v3368_v12  ;;  %1846 = vmatpush.bf16.msra.mxu2 %v3382_v13  ;;  %v929_v12 = vrot.slane %v3316_v7, 1  ;;  %v1369_v13 = vor.u32 %v1368_v9, %v1365_v8  ;;  %v1327_v7 = vunpack.c.l.b16 %v1272_v3 }
  0xba   : > { %793 = vmatmul.bf16.vlgmr.msrb.gmra.mxu1 %v690_v29  ;;  %999 = vmatmul.bf16.vlgmr.msrb.gmra.mxu2 %v926_v30  ;;  %v1375_v29 = vshll.u32 %v3345_v17, 16  ;;  %v707_v30 = vshrl.u32 %v3302_v62, 16  ;;  %v3384_v62 = vld [vmem:[%s3910_s13 + $0x14] sm:$0xff] }
  0xbb   : > { %1460 = vmatmul.bf16.vlgmr.msrb.gmra.mxu0 %v1352_v32  ;;  %v930_v16 = vsel %vm923_vm2, %v927_v51, %v929_v12  ;;  %v1370_v18 = vsel %vm1335_vm3, %v1360_v52, %v1369_v13  ;;  %v3317_v32 = vld [vmem:[%s3910_s13 + $0x20] sm:$0xff]  ;;  %v3405_v51 = vld [vmem:[%s3848_s27 + $0x210] sm:$0xff]  ;;  %v1381_v52 = vshrl.u32 %v3346_v45, 16  ;;  %v1992_v10 = vshll.u32 %v3384_v62, 16 }
  0xbc   : > { %2295 = vmatpush.bf16.msra.mxu0 %v3410_v23  ;;  %v3303_v23 = vld [vmem:[%s3910_s13 + $0x20] sm:$0xff]  ;;  %v1377_v35 = vrot.slane %v1375_v29, 3  ;;  %v709_v37 = vor.u32 %v707_v30, %v705_v11  ;;  %v1334_v17 = vpack.c.b16 %v1327_v7, %v1327_v7  ;;  %v3387_v7 = vld [vmem:[%s3910_s13 + $0x2c] sm:$0xff] }
  0xbd   : > { %1659 = vmatpush.bf16.msra.mxu1 %v3367_v24  ;;  %1847 = vmatpush.bf16.msra.mxu2 %v3381_v25  ;;  %v3391_v24 = vld [vmem:[%s3848_s27 + $0x1d0] sm:$0xff]  ;;  %v3376_v25 = vld [vmem:[%s3848_s27 + $0x188] sm:$0xff]  ;;  %v715_v56 = vshrl.u32 %v3303_v23, 16  ;;  %v3385_v30 = vld [vmem:[%s3910_s13 + $0x1c] sm:$0xff] }
  0xbe   : > { %2095 = vmatpush.bf16.msrb.mxu3 %v3391_v24 }
  0xbf   : > { %1215 = vmatmul.bf16.gmra.mxu3 %v1136_v40  ;;  %v1378_v40 = vor.u32 %v1377_v35, %v1374_v34  ;;  %v1996_v35 = vshrl.u32 %v3384_v62, 16 }
  0xc0   : > { %2296 = vmatpush.bf16.msra.mxu0 %v3409_v38 }
  0xc1   : > { %1660 = vmatpush.bf16.msra.mxu1 %v3366_v31  ;;  %1848 = vmatpush.bf16.msra.mxu2 %v3380_v33  ;;  %v711_v31 = vshll.u32 %v3303_v23, 16  ;;  %v1066_v33 = vld [vmem:[%s3910_s13 + $0x34] sm:$0x3]  ;;  %v1379_v46 = vsel %vm1335_vm3, %v1369_v13, %v1378_v40  ;;  %v670_v13 = vunpack.c.l.b16 %v615_v4  ;;  %v1393_v23 = vshll.u32 %v1334_v17, 16 }
  0xc2   : > { %v1121_v36 = vunpack.c.l.b16 %v1066_v33  ;;  %2096 = vmatpush.bf16.msrb.mxu3 %v3390_v49  ;;  %v3397_v49 = vld [vmem:[%s3910_s13 + $0xc] sm:$0xf0]  ;;  %v3357_v4 = vld [vmem:[%s3910_s13 + $0x14] sm:$0xff] }
  0xc3   : > { %v713_v38 = vrot.slane %v711_v31, 1  ;;  %v1395_v29 = vrot.slane %v1393_v23, 3 }
  0xc4   : > { %2297 = vmatpush.bf16.msra.mxu0 %v3408_v63  ;;  %v1128_v41 = vpack.c.b16 %v1121_v36, %v1121_v36  ;;  %v2000_v36 = vshll.u32 %v3385_v30, 16 }
  0xc5   : > { %1661 = vmatpush.bf16.msra.mxu1 %v3365_v39  ;;  %1849 = vmatpush.bf16.msra.mxu2 %v3379_v43  ;;  %v931_v39 = vrot.slane %v3317_v32, 1  ;;  %v714_v42 = vsel %vm678_vm1, %v709_v37, %v713_v38 }
  0xc6   : > { %v1141_v48 = vrot.slane %v1128_v41, 2  ;;  %2097 = vmatpush.bf16.msrb.mxu3 %v3389_v59  ;;  %v2002_v41 = vrot.slane %v2000_v36, 1  ;;  %v2020_v36 = vshrl.u32 %v3387_v7, 16 }
  0xc7   : > { %v932_v43 = vsel %vm923_vm2, %v929_v12, %v931_v39 }
  0xc8   : > { %2298 = vmatpush.bf16.msra.mxu0 %v3407_v20  ;;  %v677_v20 = vpack.c.b16 %v670_v13, %v670_v13 }
  0xc9   : > { %1662 = vmatpush.bf16.msra.mxu1 %v3364_v58  ;;  %1850 = vmatpush.bf16.msra.mxu2 %v3378_v60  ;;  %v3318_v58 = vld [vmem:[%s3910_s13 + $0x28] sm:$0xff]  ;;  %v1383_v60 = vrot.slane %v1381_v52, 2 }
  0xca   : > { %798 = vmatmul.bf16.gmra.mxu1 %v698_v54  ;;  %1004 = vmatmul.bf16.gmra.mxu2 %v928_v55  ;;  %v1142_v54 = vsel %vm1129_vm0, %v1139_v21, %v1141_v48  ;;  %v3383_v55 = vld [vmem:[%s3910_s13 + $0xc] sm:$0xff]  ;;  %v915_v21 = vunpack.c.l.b16 %v860_v14  ;;  %v2016_v14 = vshll.u32 %v3387_v7, 16  ;;  %v3372_v7 = vld [vmem:[%s3910_s13 + $0x24] sm:$0xff] }
  0xcb   : > { %1465 = vmatmul.bf16.gmra.mxu0 %v1361_v57  ;;  %v719_v57 = vshll.u32 %v3304_v50, 16  ;;  %v1987_v63 = vshll.u32 %v3383_v55, 16  ;;  %v1387_v6 = vor.u32 %v1386_v61, %v1383_v60  ;;  %v1985_v8 = vshrl.u32 %v3383_v55, 16  ;;  %v3217_v48 = vld [vmem:[%s3910_s13 + $0xc] sm:$0xe] }
  0xcc   : > { %2299 = vmatpush.bf16.msra.mxu0 %v3406_v26  ;;  %v727_v26 = vshll.u32 %v677_v20, 16  ;;  %v2018_v20 = vrot.slane %v2016_v14, 1 }
  0xcd   : > { %1663 = vmatpush.bf16.msra.mxu1 %v3363_v0  ;;  %1851 = vmatpush.bf16.msra.mxu2 %v3377_v19  ;;  %v717_v0 = vor.u32 %v715_v56, %v713_v38  ;;  %v721_v1 = vrot.slane %v719_v57, 1  ;;  %v1989_v9 = vrot.slane %v1987_v63, 1  ;;  %v1994_v19 = vrot.slane %v1992_v10, 1 }
  0xce   : > { %v729_v32 = vrot.slane %v727_v26, 1  ;;  %v2004_v57 = vshrl.u32 %v3385_v30, 16 }
  0xcf   : > { %1220 = vmatmul.bf16.gmra.mxu3 %v1138_v2  ;;  %v933_v2 = vrot.slane %v3318_v58, 1  ;;  %v722_v11 = vsel %vm678_vm1, %v717_v0, %v721_v1 }
  0xd0   : > { %2300 = vmatpush.bf16.msra.mxu0 %v3405_v51  ;;  %v3386_v51 = vld [vmem:[%s3910_s13 + $0x24] sm:$0xff]  ;;  %v2006_v63 = vor.u32 %v2004_v57, %v2002_v41  ;;  %v3401_v57 = vld [vmem:[%s3910_s13 + $0x2c] sm:$0xff] }
  0xd1   : > { %1664 = vmatpush.bf16.msra.mxu1 %v3362_v22  ;;  %1852 = vmatpush.bf16.msra.mxu2 %v3376_v25  ;;  %v934_v12 = vsel %vm923_vm2, %v931_v39, %v933_v2  ;;  %v1390_v22 = vshrl.u32 %v1334_v17, 16  ;;  %v723_v25 = vshrl.u32 %v3304_v50, 16  ;;  %v3218_v50 = vor.u32 %v3397_v49, %v3217_v48 }
  0xd2   : > { %v2008_v58 = vshll.u32 %v3386_v51, 16  ;;  %v2012_v13 = vshrl.u32 %v3386_v51, 16 }
  0xd3   : > { %v1392_v28 = vrot.slane %v1390_v22, 2  ;;  %v725_v31 = vor.u32 %v723_v25, %v721_v1  ;;  %v2228_v55 = vrot.slane %v3218_v50, 1  ;;  %v3358_v25 = vld [vmem:[%s3910_s13 + $0x1c] sm:$0xff] }
  0xd4   : > { %2301 = vmatpush.bf16.msra.mxu0 %v3404_v5  ;;  %v2010_v0 = vrot.slane %v2008_v58, 1  ;;  %v1596_v30 = vrot.slane %v3358_v25, 3 }
  0xd5   : > { %1665 = vmatpush.bf16.msra.mxu1 %v3361_v47  ;;  %1853 = vmatpush.bf16.msra.mxu2 %v3375_v44  ;;  %v1396_v34 = vor.u32 %v1395_v29, %v1392_v28  ;;  %v730_v37 = vsel %vm678_vm1, %v725_v31, %v729_v32  ;;  %v3398_v44 = vld [vmem:[%s3910_s13 + $0x14] sm:$0xff] }
  0xd6   : > { %v2229_v56 = vrot.slane %v3398_v44, 1  ;;  %v3388_v28 = vld [vmem:[%s3910_s13 + $0x34] sm:$0xff] }
  0xd7   : > { %v1397_v39 = vsel %vm1335_vm3, %v1387_v6, %v1396_v34  ;;  %v428_v29 = vld [vmem:[#allocation3 + $0x30] sm:$0xff]  ;;  %v3371_v34 = vld [vmem:[%s3910_s13 + $0x1c] sm:$0xff] }
  0xd8   : > { %v2230_v62 = vsel %vm923_vm2, %v2228_v55, %v2229_v56 }
  0xda   : > { %803 = vmatmul.bf16.gmra.mxu1 %v706_v15  ;;  %1009 = vmatmul.bf16.gmra.mxu2 %v930_v16  ;;  %v3403_v15 = vld [vmem:[%s3848_s27 + $0x200] sm:$0xff]  ;;  %v1388_v16 = vsel %vm1335_vm3, %v1378_v40, %v1387_v6  ;;  %v1998_v40 = vor.u32 %v1996_v35, %v1994_v19 }
  0xdb   : > { %1470 = vmatmul.bf16.gmra.mxu0 %v1370_v18  ;;  %v1990_v18 = vor.u32 %v1989_v9, %v1985_v8  ;;  %v3399_v6 = vld [vmem:[%s3910_s13 + $0x1c] sm:$0xff]  ;;  %v1594_v8 = vrot.slane %v3357_v4, 3  ;;  %v2235_v4 = vrot.slane %v3401_v57, 1 }
  0xdc   : > { %2302 = vmatpush.bf16.msra.mxu0 %v3403_v15  ;;  %v2003_v45 = vsel %vm678_vm1, %v1998_v40, %v2002_v41 }
  0xdd   : > { %v1995_v24 = vsel %vm678_vm1, %v1990_v18, %v1994_v19  ;;  %v2014_v19 = vor.u32 %v2012_v13, %v2010_v0 }
  0xdf   : > { %1225 = vmatmul.bf16.gmra.mxu3 %v1140_v27  ;;  %v922_v27 = vpack.c.b16 %v915_v21, %v915_v21  ;;  %v2019_v23 = vsel %vm678_vm1, %v2014_v19, %v2018_v20 }
  0xe1   : > { %v935_v33 = vrot.slane %v922_v27, 1  ;;  %v3400_v27 = vld [vmem:[%s3910_s13 + $0x24] sm:$0xff] }
  0xe2   : > { %v2233_v35 = vrot.slane %v3400_v27, 1 }
  0xe3   : > { %v936_v38 = vsel %vm923_vm2, %v933_v2, %v935_v33  ;;  %v2011_v2 = vsel %vm678_vm1, %v2006_v63, %v2010_v0 }
  0xe4   : > { %v2236_v19 = vsel %vm923_vm2, %v2233_v35, %v2235_v4 }
  0xea   : > { %808 = vmatmul.bf16.gmra.mxu1 %v714_v42  ;;  %1014 = vmatmul.bf16.gmra.mxu2 %v932_v43  ;;  %v3001_v42 = vld [vmem:[%s3910_s13 + $0x4] sm:$0x8]  ;;  %v3355_v43 = vld [vmem:[%s3910_s13 + $0x4] sm:$0xf0] }
  0xeb   : > { %1475 = vmatmul.bf16.gmra.mxu0 %v1379_v46  ;;  %v3356_v46 = vld [vmem:[%s3910_s13 + $0xc] sm:$0xff]  ;;  %v3002_v47 = vor.u32 %v3355_v43, %v3001_v42  ;;  %v2022_v43 = vor.u32 %v2020_v36, %v2018_v20 }
  0xec   : > { %v1592_v53 = vrot.slane %v3356_v46, 3  ;;  %v429_v46 = vld [vmem:[#allocation3] sm:$0xff] }
  0xed   : > { %v1591_v52 = vrot.slane %v3002_v47, 3  ;;  %v1921_v47 = vld [vmem:[%s3910_s13 + $0x3c] sm:$0x1] }
  0xef   : > { %1230 = vmatmul.bf16.gmra.mxu3 %v1142_v54  ;;  %v3369_v54 = vld [vmem:[%s3910_s13 + $0xc] sm:$0xff]  ;;  %v1593_v60 = vsel %vm1590_vm4, %v1591_v52, %v1592_v53  ;;  %v1976_v52 = vunpack.c.l.b16 %v1921_v47 }
  0xfa   : > { %813 = vmatmul.bf16.gmra.mxu1 %v722_v11  ;;  %1019 = vmatmul.bf16.gmra.mxu2 %v934_v12  ;;  %v3370_v11 = vld [vmem:[%s3910_s13 + $0x14] sm:$0xff]  ;;  %v2231_v12 = vrot.slane %v3399_v6, 1 }
  0xfb   : > { %1480 = vmatmul.bf16.gmra.mxu0 %v1388_v16  ;;  %v1595_v16 = vsel %vm1590_vm4, %v1592_v53, %v1594_v8 }
  0xfc   : > { %v2232_v18 = vsel %vm923_vm2, %v2229_v56, %v2231_v12  ;;  %v2234_v42 = vsel %vm923_vm2, %v2231_v12, %v2233_v35 }
  0xff   : > { %2098 = vmatmul.bf16.vlgmr.msrb.gmra.mxu3 %v1995_v24 }
 0x10a   : > { %818 = vmatmul.bf16.gmra.mxu1 %v730_v37  ;;  %1024 = vmatmul.bf16.gmra.mxu2 %v936_v38  ;;  %v2024_v37 = vshll.u32 %v3388_v28, 16 }
 0x10b   : > { %1485 = vmatmul.bf16.gmra.mxu0 %v1397_v39  ;;  %v1597_v39 = vsel %vm1590_vm4, %v1594_v8, %v1596_v30  ;;  %v2028_v8 = vshrl.u32 %v3388_v28, 16 }
 0x10f   : > { %2103 = vmatmul.bf16.gmra.mxu3 %v2003_v45  ;;  %v2026_v45 = vrot.slane %v2024_v37, 1 }
 0x111   : > { %v2027_v51 = vsel %vm678_vm1, %v2022_v43, %v2026_v45  ;;  %v2030_v20 = vor.u32 %v2028_v8, %v2026_v45  ;;  %v3373_v45 = vld [vmem:[%s3910_s13 + $0x2c] sm:$0xff] }
 0x112   : > { %v434_v8 = vld [vmem:[#allocation3 + $0x8] sm:$0xff] }
 0x117   : > { %v4166_v59 = vpop.f32.mrf.mxu1 }
 0x118   : > { %v549_v61 = vpop.f32.mrf.mxu0 }
 0x119   : > { %v579_v33 = vadd.f32 %v549_v61, %v428_v29  ;;  %v1983_v61 = vpack.c.b16 %v1976_v52, %v1976_v52 }
 0x11a   : > { %1666 = vmatmul.bf16.vlgmr.msra.gmra.mxu1 %v1593_v60  ;;  %1854 = vmatmul.bf16.vlgmr.msra.gmra.mxu2 %v3369_v54  ;;  %v3359_v54 = vld [vmem:[%s3910_s13 + $0x24] sm:$0xff] }
 0x11b   : > { %2303 = vmatmul.bf16.vlgmr.msra.gmra.mxu0 %v2230_v62  ;;  %v430_v62 = vld [vmem:[#allocation3 + $0x58] sm:$0xff]  ;;  %v1598_v63 = vrot.slane %v3359_v54, 3  ;;  %v433_v54 = vld [vmem:[#allocation3 + $0x20] sm:$0xff] }
 0x11d   : > { %v4170_v1 = vpop.f32.mrf.mxu2 }
 0x11f   : > { %v4173_v3 = vpop.f32.mrf.mxu1  ;;  %2108 = vmatmul.bf16.gmra.mxu3 %v2011_v2 }
 0x120   : > { %v551_v5 = vpop.f32.mrf.mxu0 }
 0x121   : > { %v580_v44 = vadd.f32 %v551_v5, %v429_v46 }
 0x122   : > { %v1206_v9 = vpop.f32.mrf.mxu3 }
 0x125   : > { %v4178_v10 = vpop.f32.mrf.mxu2 }
 0x127   : > { %v4181_v15 = vpop.f32.mrf.mxu1 }
 0x128   : > { %v554_v17 = vpop.f32.mrf.mxu0 }
 0x129   : > { %v581_v5 = vadd.f32 %v554_v17, %v430_v62 }
 0x12a   : > { %1671 = vmatmul.bf16.gmra.mxu1 %v1595_v16  ;;  %1859 = vmatmul.bf16.gmra.mxu2 %v3370_v11  ;;  %v1208_v21 = vpop.f32.mrf.mxu3  ;;  %v2032_v11 = vshll.u32 %v1983_v61, 16 }
 0x12b   : > { %2308 = vmatmul.bf16.gmra.mxu0 %v2232_v18 }
 0x12c   : > { %v2034_v17 = vrot.slane %v2032_v11, 1 }
 0x12d   : > { %v4185_v22 = vpop.f32.mrf.mxu2 }
 0x12f   : > { %v4188_v24 = vpop.f32.mrf.mxu1  ;;  %2113 = vmatmul.bf16.gmra.mxu3 %v2019_v23  ;;  %v431_v23 = vld [vmem:[#allocation3 + $0x18] sm:$0xff] }
 0x130   : > { %v4191_v26 = vpop.f32.mrf.mxu0 }
 0x131   : > { %v582_v28 = vadd.f32 %v4191_v26, %v431_v23 }
 0x132   : > { %v4195_v31 = vpop.f32.mrf.mxu3 }
 0x135   : > { %v4197_v32 = vpop.f32.mrf.mxu2 }
 0x137   : > { %v794_v38 = vpop.f32.mrf.mxu1 }
 0x138   : > { %v824_v40 = vadd.f32 %v794_v38, %v579_v33  ;;  %v1461_v41 = vpop.f32.mrf.mxu0  ;;  %v3360_v33 = vld [vmem:[%s3910_s13 + $0x2c] sm:$0xff]  ;;  %v3402_v38 = vld [vmem:[%s3910_s13 + $0x34] sm:$0xff] }
 0x139   : > { %v2237_v46 = vrot.slane %v3402_v38, 1 }
 0x13a   : > { %1676 = vmatmul.bf16.gmra.mxu1 %v1597_v39  ;;  %1864 = vmatmul.bf16.gmra.mxu2 %v3371_v34  ;;  %v4203_v48 = vpop.f32.mrf.mxu3  ;;  %v432_v39 = vld [vmem:[#allocation3 + $0x50] sm:$0xff] }
 0x13b   : > { %2313 = vmatmul.bf16.gmra.mxu0 %v2234_v42  ;;  %v583_v26 = vadd.f32 %v4166_v59, %v432_v39  ;;  %v436_v39 = vld [vmem:[#allocation3 + $0x28] sm:$0xff] }
 0x13d   : > { %v1000_v49 = vpop.f32.mrf.mxu2 }
 0x13e   : > { %v1030_v50 = vadd.f32 %v1000_v49, %v824_v40  ;;  %v1600_v40 = vrot.slane %v3360_v33, 3 }
 0x13f   : > { %v796_v53 = vpop.f32.mrf.mxu1  ;;  %2118 = vmatmul.bf16.gmra.mxu3 %v2027_v51 }
 0x140   : > { %v825_v55 = vadd.f32 %v796_v53, %v580_v44  ;;  %v1236_v56 = vadd.f32 %v1206_v9, %v1030_v50  ;;  %v1463_v60 = vpop.f32.mrf.mxu0  ;;  %v1599_v9 = vsel %vm1590_vm4, %v1596_v30, %v1598_v63  ;;  %v1601_v49 = vsel %vm1590_vm4, %v1598_v63, %v1600_v40  ;;  %v1527_v50 = vld [vmem:[%s3910_s13 + $0x34] sm:$0x7] }
 0x141   : > { %v2238_v53 = vsel %vm923_vm2, %v2235_v4, %v2237_v46  ;;  %v1582_v59 = vunpack.c.l.b16 %v1527_v50 }
 0x142   : > { %v4208_v58 = vadd.f32 %v1461_v41, %v1236_v56  ;;  %v4210_v0 = vpop.f32.mrf.mxu3 }
 0x143   : > { %v1589_v63 = vpack.c.b16 %v1582_v59, %v1582_v59 }
 0x145   : > { %v1002_v2 = vpop.f32.mrf.mxu2  ;;  %v1602_v11 = vrot.slane %v1589_v63, 3 }
 0x146   : > { %v1031_v6 = vadd.f32 %v1002_v2, %v825_v55  ;;  %v2165_v55 = vld [vmem:[%s3910_s13 + $0x3c] sm:$0x1] }
 0x147   : > { %v799_v12 = vpop.f32.mrf.mxu1  ;;  %v2220_v62 = vunpack.c.l.b16 %v2165_v55 }
 0x148   : > { %v826_v13 = vadd.f32 %v799_v12, %v581_v5  ;;  %v1237_v14 = vadd.f32 %v1208_v21, %v1031_v6  ;;  %v1466_v18 = vpop.f32.mrf.mxu0  ;;  %v2035_v21 = vsel %vm678_vm1, %v2030_v20, %v2034_v17  ;;  %v1603_v20 = vsel %vm1590_vm4, %v1600_v40, %v1602_v11 }
 0x149   : > { %v2227_v4 = vpack.c.b16 %v2220_v62, %v2220_v62 }
 0x14a   : > { %1681 = vmatmul.bf16.gmra.mxu1 %v1599_v9  ;;  %1869 = vmatmul.bf16.gmra.mxu2 %v3372_v7  ;;  %v4214_v16 = vadd.f32 %v1463_v60, %v1237_v14  ;;  %v1218_v25 = vpop.f32.mrf.mxu3  ;;  %v584_v60 = vadd.f32 %v4173_v3, %v433_v54  ;;  %v3374_v3 = vld [vmem:[%s3910_s13 + $0x34] sm:$0xff] }
 0x14b   : > { %2318 = vmatmul.bf16.gmra.mxu0 %v2236_v19 }
 0x14d   : > { %v1005_v27 = vpop.f32.mrf.mxu2 }
 0x14e   : > { %v1032_v29 = vadd.f32 %v1005_v27, %v826_v13  ;;  %v585_v13 = vadd.f32 %v4181_v15, %v434_v8 }
 0x14f   : > { %v801_v30 = vpop.f32.mrf.mxu1  ;;  %2123 = vmatmul.bf16.gmra.mxu3 %v2035_v21 }
 0x150   : > { %v827_v34 = vadd.f32 %v801_v30, %v582_v28  ;;  %v1238_v36 = vadd.f32 %v4195_v31, %v1032_v29  ;;  %v1468_v37 = vpop.f32.mrf.mxu0  ;;  %v435_v29 = vld [vmem:[#allocation3 + $0x38] sm:$0xff] }
 0x151   : > { %v586_v15 = vadd.f32 %v4188_v24, %v435_v29  ;;  %v437_v24 = vld [vmem:[#allocation3 + $0x48] sm:$0xff] }
 0x152   : > { %v4221_v35 = vadd.f32 %v1466_v18, %v1238_v36  ;;  %v1221_v41 = vpop.f32.mrf.mxu3  ;;  %v2239_v18 = vrot.slane %v2227_v4, 1  ;;  %v588_v50 = vadd.f32 %v4178_v10, %v437_v24 }
 0x154   : > { %v2240_v28 = vsel %vm923_vm2, %v2237_v46, %v2239_v18 }
 0x155   : > { %v1007_v42 = vpop.f32.mrf.mxu2 }
 0x156   : > { %v1033_v43 = vadd.f32 %v1007_v42, %v827_v34 }
 0x157   : > { %v804_v47 = vpop.f32.mrf.mxu1 }
 0x158   : > { %v828_v31 = vadd.f32 %v804_v47, %v583_v26  ;;  %v1239_v44 = vadd.f32 %v4203_v48, %v1033_v43  ;;  %v1471_v52 = vpop.f32.mrf.mxu0  ;;  %v587_v26 = vadd.f32 %v4170_v1, %v436_v39  ;;  %v438_v1 = vld [vmem:[#allocation3 + $0x10] sm:$0xff] }
 0x15a   : > { %1686 = vmatmul.bf16.gmra.mxu1 %v1601_v49  ;;  %1874 = vmatmul.bf16.gmra.mxu2 %v3373_v45  ;;  %v4229_v51 = vadd.f32 %v1468_v37, %v1239_v44  ;;  %v1223_v56 = vpop.f32.mrf.mxu3 }
 0x15b   : > { %2323 = vmatmul.bf16.gmra.mxu0 %v2238_v53 }
 0x15d   : > { %v1010_v57 = vpop.f32.mrf.mxu2 }
 0x15e   : > { %v1034_v61 = vadd.f32 %v1010_v57, %v828_v31 }
 0x15f   : > { %v806_v48 = vpop.f32.mrf.mxu1 }
 0x160   : > { %v829_v2 = vadd.f32 %v806_v48, %v584_v60  ;;  %v1240_v5 = vadd.f32 %v4210_v0, %v1034_v61  ;;  %v1473_v7 = vpop.f32.mrf.mxu0  ;;  %v589_v61 = vadd.f32 %v4185_v22, %v438_v1 }
 0x162   : > { %v4235_v6 = vadd.f32 %v1471_v52, %v1240_v5  ;;  %v1226_v12 = vpop.f32.mrf.mxu3 }
 0x165   : > { %v1012_v9 = vpop.f32.mrf.mxu2 }
 0x166   : > { %v1035_v14 = vadd.f32 %v1012_v9, %v829_v2 }
 0x167   : > { %v809_v19 = vpop.f32.mrf.mxu1 }
 0x168   : > { %v830_v17 = vadd.f32 %v809_v19, %v585_v13  ;;  %v1241_v23 = vadd.f32 %v1218_v25, %v1035_v14  ;;  %v1476_v27 = vpop.f32.mrf.mxu0 }
 0x16a   : > { %1691 = vmatmul.bf16.gmra.mxu1 %v1603_v20  ;;  %1879 = vmatmul.bf16.gmra.mxu2 %v3374_v3  ;;  %v4240_v0 = vadd.f32 %v1473_v7, %v1241_v23  ;;  %v1228_v21 = vpop.f32.mrf.mxu3  ;;  %v439_v7 = vld [vmem:[#allocation3 + $0x40] sm:$0xff] }
 0x16b   : > { %2328 = vmatmul.bf16.gmra.mxu0 %v2240_v28  ;;  %v590_v8 = vadd.f32 %v4197_v32, %v439_v7 }
 0x16d   : > { %v1015_v30 = vpop.f32.mrf.mxu2 }
 0x16e   : > { %v1036_v33 = vadd.f32 %v1015_v30, %v830_v17 }
 0x16f   : > { %v811_v34 = vpop.f32.mrf.mxu1 }
 0x170   : > { %v831_v36 = vadd.f32 %v811_v34, %v586_v15  ;;  %v1242_v37 = vadd.f32 %v1221_v41, %v1036_v33  ;;  %v1478_v25 = vpop.f32.mrf.mxu0 }
 0x172   : > { %v4244_v38 = vadd.f32 %v1476_v27, %v1242_v37  ;;  %v1231_v42 = vpop.f32.mrf.mxu3 }
 0x175   : > { %v1017_v40 = vpop.f32.mrf.mxu2 }
 0x176   : > { %v1037_v43 = vadd.f32 %v1017_v40, %v831_v36 }
 0x177   : > { %v814_v45 = vpop.f32.mrf.mxu1 }
 0x178   : > { %v832_v46 = vadd.f32 %v814_v45, %v587_v26  ;;  %v1243_v47 = vadd.f32 %v1223_v56, %v1037_v43  ;;  %v1481_v31 = vpop.f32.mrf.mxu0 }
 0x17a   : > { %v4247_v49 = vadd.f32 %v1478_v25, %v1243_v47  ;;  %v1233_v53 = vpop.f32.mrf.mxu3 }
 0x17d   : > { %v1020_v44 = vpop.f32.mrf.mxu2 }
 0x17e   : > { %v1038_v41 = vadd.f32 %v1020_v44, %v832_v46 }
 0x17f   : > { %v816_v52 = vpop.f32.mrf.mxu1 }
 0x180   : > { %v833_v54 = vadd.f32 %v816_v52, %v588_v50  ;;  %v1244_v59 = vadd.f32 %v1226_v12, %v1038_v41  ;;  %v1483_v57 = vpop.f32.mrf.mxu0 }
 0x182   : > { %v4250_v55 = vadd.f32 %v1481_v31, %v1244_v59  ;;  %v2099_v2 = vpop.f32.mrf.mxu3 }
 0x185   : > { %v1022_v60 = vpop.f32.mrf.mxu2 }
 0x186   : > { %v1039_v56 = vadd.f32 %v1022_v60, %v833_v54 }
 0x187   : > { %v819_v62 = vpop.f32.mrf.mxu1 }
 0x188   : > { %v834_v48 = vadd.f32 %v819_v62, %v589_v61  ;;  %v1245_v63 = vadd.f32 %v1228_v21, %v1039_v56  ;;  %v1486_v10 = vpop.f32.mrf.mxu0 }
 0x18a   : > { %v4253_v5 = vadd.f32 %v1483_v57, %v1245_v63  ;;  %v2101_v22 = vpop.f32.mrf.mxu3 }
 0x18d   : > { %v1025_v4 = vpop.f32.mrf.mxu2 }
 0x18e   : > { %v1040_v11 = vadd.f32 %v1025_v4, %v834_v48 }
 0x18f   : > { %v821_v12 = vpop.f32.mrf.mxu1 }
 0x190   : > { %v835_v9 = vadd.f32 %v821_v12, %v590_v8  ;;  %v1246_v13 = vadd.f32 %v1231_v42, %v1040_v11  ;;  %v1488_v3 = vpop.f32.mrf.mxu0 }
 0x192   : > { %v4256_v14 = vadd.f32 %v1486_v10, %v1246_v13  ;;  %v2104_v21 = vpop.f32.mrf.mxu3 }
 0x195   : > { %v1027_v18 = vpop.f32.mrf.mxu2 }
 0x196   : > { %v1041_v19 = vadd.f32 %v1027_v18, %v835_v9 }
 0x197   : > { %v1667_v20 = vpop.f32.mrf.mxu1 }
 0x198   : > { %v1247_v17 = vadd.f32 %v1233_v53, %v1041_v19  ;;  %v2304_v27 = vpop.f32.mrf.mxu0  ;;  %v1697_v28 = vadd.f32 %v1667_v20, %v4208_v58 }
 0x19a   : > { %v4258_v23 = vadd.f32 %v1488_v3, %v1247_v17  ;;  %v2106_v40 = vpop.f32.mrf.mxu3 }
 0x19d   : > { %v1855_v29 = vpop.f32.mrf.mxu2 }
 0x19e   : > { %v1885_v32 = vadd.f32 %v1855_v29, %v1697_v28 }
 0x19f   : > { %v1669_v30 = vpop.f32.mrf.mxu1 }
 0x1a0   : > { %v2129_v15 = vadd.f32 %v2099_v2, %v1885_v32  ;;  %v2306_v34 = vpop.f32.mrf.mxu0  ;;  %v1698_v36 = vadd.f32 %v1669_v30, %v4214_v16 }
 0x1a2   : > { %v2334_v33 = vadd.f32 %v2304_v27, %v2129_v15  ;;  %v2109_v24 = vpop.f32.mrf.mxu3 }
 0x1a4   : > { %2346 = vst [vmem:[#allocation3 + $0x30] sm:$0xff] %v2334_v33 }
 0x1a5   : > { %v1857_v37 = vpop.f32.mrf.mxu2 }
 0x1a6   : > { %v1886_v25 = vadd.f32 %v1857_v37, %v1698_v36 }
 0x1a7   : > { %v1672_v39 = vpop.f32.mrf.mxu1 }
 0x1a8   : > { %v2130_v42 = vadd.f32 %v2101_v22, %v1886_v25  ;;  %v2309_v43 = vpop.f32.mrf.mxu0  ;;  %v1699_v45 = vadd.f32 %v1672_v39, %v4221_v35 }
 0x1aa   : > { %v2335_v26 = vadd.f32 %v2306_v34, %v2130_v42  ;;  %v2111_v1 = vpop.f32.mrf.mxu3 }
 0x1ac   : > { %2347 = vst [vmem:[#allocation3] sm:$0xff] %v2335_v26 }
 0x1ad   : > { %v1860_v58 = vpop.f32.mrf.mxu2 }
 0x1ae   : > { %v1887_v46 = vadd.f32 %v1860_v58, %v1699_v45 }
 0x1af   : > { %v1674_v47 = vpop.f32.mrf.mxu1 }
 0x1b0   : > { %v2131_v31 = vadd.f32 %v2104_v21, %v1887_v46  ;;  %v2311_v50 = vpop.f32.mrf.mxu0  ;;  %v1700_v16 = vadd.f32 %v1674_v47, %v4229_v51 }
 0x1b2   : > { %v2336_v44 = vadd.f32 %v2309_v43, %v2131_v31  ;;  %v2114_v10 = vpop.f32.mrf.mxu3 }
 0x1b4   : > { %2348 = vst [vmem:[#allocation3 + $0x58] sm:$0xff] %v2336_v44 }
 0x1b5   : > { %v1862_v41 = vpop.f32.mrf.mxu2 }
 0x1b6   : > { %v1888_v52 = vadd.f32 %v1862_v41, %v1700_v16 }
 0x1b7   : > { %v1677_v53 = vpop.f32.mrf.mxu1 }
 0x1b8   : > { %v2132_v54 = vadd.f32 %v2106_v40, %v1888_v52  ;;  %v2314_v57 = vpop.f32.mrf.mxu0  ;;  %v1701_v35 = vadd.f32 %v1677_v53, %v4235_v6 }
 0x1ba   : > { %v2337_v59 = vadd.f32 %v2311_v50, %v2132_v54  ;;  %v2116_v22 = vpop.f32.mrf.mxu3 }
 0x1bc   : > { %2349 = vst [vmem:[#allocation3 + $0x18] sm:$0xff] %v2337_v59 }
 0x1bd   : > { %v1865_v60 = vpop.f32.mrf.mxu2 }
 0x1be   : > { %v1889_v61 = vadd.f32 %v1865_v60, %v1701_v35 }
 0x1bf   : > { %v1679_v56 = vpop.f32.mrf.mxu1 }
 0x1c0   : > { %v2133_v62 = vadd.f32 %v2109_v24, %v1889_v61  ;;  %v2316_v63 = vpop.f32.mrf.mxu0  ;;  %v1702_v2 = vadd.f32 %v1679_v56, %v4240_v0 }
 0x1c2   : > { %v2338_v48 = vadd.f32 %v2314_v57, %v2133_v62  ;;  %v2119_v21 = vpop.f32.mrf.mxu3 }
 0x1c4   : > { %2350 = vst [vmem:[#allocation3 + $0x50] sm:$0xff] %v2338_v48 }
 0x1c5   : > { %v1867_v51 = vpop.f32.mrf.mxu2 }
 0x1c6   : > { %v1890_v7 = vadd.f32 %v1867_v51, %v1702_v2 }
 0x1c7   : > { %v1682_v4 = vpop.f32.mrf.mxu1 }
 0x1c8   : > { %v2134_v8 = vadd.f32 %v2111_v1, %v1890_v7  ;;  %v2319_v12 = vpop.f32.mrf.mxu0  ;;  %v1703_v9 = vadd.f32 %v1682_v4, %v4244_v38 }
 0x1ca   : > { %v2339_v11 = vadd.f32 %v2316_v63, %v2134_v8  ;;  %v2121_v25 = vpop.f32.mrf.mxu3 }
 0x1cc   : > { %2351 = vst [vmem:[#allocation3 + $0x20] sm:$0xff] %v2339_v11 }
 0x1cd   : > { %v1870_v6 = vpop.f32.mrf.mxu2 }
 0x1ce   : > { %v1891_v13 = vadd.f32 %v1870_v6, %v1703_v9 }
 0x1cf   : > { %v1684_v3 = vpop.f32.mrf.mxu1 }
 0x1d0   : > { %v2135_v18 = vadd.f32 %v2114_v10, %v1891_v13  ;;  %v2321_v20 = vpop.f32.mrf.mxu0  ;;  %v1704_v0 = vadd.f32 %v1684_v3, %v4247_v49 }
 0x1d2   : > { %v2340_v19 = vadd.f32 %v2319_v12, %v2135_v18  ;;  %v2124_v46 = vpop.f32.mrf.mxu3 }
 0x1d4   : > { %2352 = vst [vmem:[#allocation3 + $0x8] sm:$0xff] %v2340_v19 }
 0x1d5   : > { %v1872_v17 = vpop.f32.mrf.mxu2 }
 0x1d6   : > { %v1892_v27 = vadd.f32 %v1872_v17, %v1704_v0 }
 0x1d7   : > { %v1687_v28 = vpop.f32.mrf.mxu1 }
 0x1d8   : > { %v2136_v29 = vadd.f32 %v2116_v22, %v1892_v27  ;;  %v2324_v30 = vpop.f32.mrf.mxu0  ;;  %v1705_v38 = vadd.f32 %v1687_v28, %v4250_v55 }
 0x1da   : > { %v2341_v32 = vadd.f32 %v2321_v20, %v2136_v29  ;;  %v2126_v52 = vpop.f32.mrf.mxu3 }
 0x1dc   : > { %2353 = vst [vmem:[#allocation3 + $0x38] sm:$0xff] %v2341_v32 }
 0x1dd   : > { %v1875_v15 = vpop.f32.mrf.mxu2 }
 0x1de   : > { %v1893_v33 = vadd.f32 %v1875_v15, %v1705_v38 }
 0x1df   : > { %v1689_v34 = vpop.f32.mrf.mxu1 }
 0x1e0   : > { %v2137_v36 = vadd.f32 %v2119_v21, %v1893_v33  ;;  %v1706_v39 = vadd.f32 %v1689_v34, %v4253_v5  ;;  %v2326_v40 = vpop.f32.mrf.mxu0 }
 0x1e2   : > { %v2342_v37 = vadd.f32 %v2324_v30, %v2137_v36 }
 0x1e4   : > { %2354 = vst [vmem:[#allocation3 + $0x28] sm:$0xff] %v2342_v37 }
 0x1e5   : > { %v1877_v49 = vpop.f32.mrf.mxu2 }
 0x1e6   : > { %v1894_v42 = vadd.f32 %v1877_v49, %v1706_v39 }
 0x1e7   : > { %v1692_v26 = vpop.f32.mrf.mxu1 }
 0x1e8   : > { %v2138_v43 = vadd.f32 %v2121_v25, %v1894_v42  ;;  %v1707_v58 = vadd.f32 %v1692_v26, %v4256_v14  ;;  %v2329_v31 = vpop.f32.mrf.mxu0 }
 0x1ea   : > { %v2343_v45 = vadd.f32 %v2326_v40, %v2138_v43 }
 0x1ec   : > { %2355 = vst [vmem:[#allocation3 + $0x48] sm:$0xff] %v2343_v45 }
 0x1ed   : > { %v1880_v55 = vpop.f32.mrf.mxu2 }
 0x1ee   : > { %v1895_v47 = vadd.f32 %v1880_v55, %v1707_v58 }
 0x1ef   : > { %v1694_v44 = vpop.f32.mrf.mxu1 }
 0x1f0   : > { %v2139_v24 = vadd.f32 %v2124_v46, %v1895_v47  ;;  %v1708_v16 = vadd.f32 %v1694_v44, %v4258_v23  ;;  %v2331_v54 = vpop.f32.mrf.mxu0 }
 0x1f2   : > { %v2344_v50 = vadd.f32 %v2329_v31, %v2139_v24 }
 0x1f4   : > { %2356 = vst [vmem:[#allocation3 + $0x10] sm:$0xff] %v2344_v50 }
 0x1f5   : > { %v1882_v5 = vpop.f32.mrf.mxu2 }
 0x1f6   : > { %v1896_v41 = vadd.f32 %v1882_v5, %v1708_v16 }
 0x1f8   : > { %v2140_v53 = vadd.f32 %v2126_v52, %v1896_v41  ;;  %2361 = sbr.rel (%p3271_p3) target bundleno = 530 (0x212), region = 80 }
 0x1fa   : > { %v2345_v59 = vadd.f32 %v2331_v54, %v2140_v53 }
 0x1fc   : > { %2357 = vst [vmem:[#allocation3 + $0x40] sm:$0xff] %v2345_v59 }
 0x1fd   : > { %v2362_v14 = vld [vmem:[#allocation3 + $0x30] sm:$0xff]  ;;  %v3515_v57 = vld [vmem:[%s4319_s3] ss:$0 sm:$0xff]  ;;  %v2364_v61 = vld [vmem:[#allocation3 + $0x58] sm:$0xff] }
 0x1fe   : > { %v4279_v23 = vld [vmem:[%s4320_s4] ss:$0 sm:$0xff]  ;;  %v2378_v35 = vmul.f32 %v3515_v57, %v2362_v14  ;;  %v2365_v56 = vld [vmem:[#allocation3 + $0x18] sm:$0xff]  ;;  %v2366_v62 = vld [vmem:[#allocation3 + $0x50] sm:$0xff]  ;;  %v2380_v48 = vmul.f32 %v3515_v57, %v2364_v61 }
 0x1ff   : > { %v2363_v1 = vld [vmem:[#allocation3] sm:$0xff]  ;;  %v2381_v63 = vmul.f32 %v3515_v57, %v2365_v56  ;;  %v2382_v2 = vmul.f32 %v3515_v57, %v2366_v62  ;;  %v2368_v10 = vld [vmem:[#allocation3 + $0x8] sm:$0xff]  ;;  %v2369_v7 = vld [vmem:[#allocation3 + $0x38] sm:$0xff] }
 0x200   : > { %v2379_v60 = vmul.f32 %v3515_v57, %v2363_v1  ;;  %v2367_v51 = vld [vmem:[#allocation3 + $0x20] sm:$0xff]  ;;  %v2394_v4 = vadd.f32 %v4279_v23, %v2378_v35  ;;  %v2384_v12 = vmul.f32 %v3515_v57, %v2368_v10  ;;  %v2396_v9 = vadd.f32 %v4279_v23, %v2380_v48  ;;  %v2370_v22 = vld [vmem:[#allocation3 + $0x28] sm:$0xff]  ;;  %v2372_v21 = vld [vmem:[#allocation3 + $0x10] sm:$0xff] }
 0x201   : > { %v2383_v11 = vmul.f32 %v3515_v57, %v2367_v51  ;;  %v2397_v6 = vadd.f32 %v4279_v23, %v2381_v63  ;;  %v2398_v13 = vadd.f32 %v4279_v23, %v2382_v2  ;;  %v2385_v3 = vmul.f32 %v3515_v57, %v2369_v7  ;;  %v2371_v18 = vld [vmem:[#allocation3 + $0x48] sm:$0xff] }
 0x202   : > { %v2395_v8 = vadd.f32 %v4279_v23, %v2379_v60  ;;  %vm2406_vm5 = vcmp.ge.f32.partialorder %v2394_v4, 0.0  ;;  %v2418_v19 = vmul.f32 0.01, %v2394_v4  ;;  %vm2408_vm7 = vcmp.ge.f32.partialorder %v2396_v9, 0.0 }
 0x203   : > { %v2420_v0 = vmul.f32 0.01, %v2396_v9  ;;  %vm2409_vm8 = vcmp.ge.f32.partialorder %v2397_v6, 0.0  ;;  %v2421_v17 = vmul.f32 0.01, %v2397_v6  ;;  %vm2410_vm9 = vcmp.ge.f32.partialorder %v2398_v13, 0.0 }
 0x204   : > { %vm2407_vm6 = vcmp.ge.f32.partialorder %v2395_v8, 0.0  ;;  %v2419_v20 = vmul.f32 0.01, %v2395_v8  ;;  %v2430_v27 = vsel %vm2406_vm5, %v2394_v4, %v2418_v19  ;;  %v2422_v29 = vmul.f32 0.01, %v2398_v13  ;;  %v2373_v25 = vld [vmem:[#allocation3 + $0x40] sm:$0xff] }
 0x205   : > { %2442 = vst [vmem:[#allocation8] sm:$0xff] %v2430_v27  ;;  %v2432_v32 = vsel %vm2408_vm7, %v2396_v9, %v2420_v0  ;;  %v2433_v30 = vsel %vm2409_vm8, %v2397_v6, %v2421_v17  ;;  %v2399_v38 = vadd.f32 %v4279_v23, %v2383_v11  ;;  %v2400_v15 = vadd.f32 %v4279_v23, %v2384_v12 }
 0x206   : > { %v2431_v28 = vsel %vm2407_vm6, %v2395_v8, %v2419_v20  ;;  %v2434_v33 = vsel %vm2410_vm9, %v2398_v13, %v2422_v29  ;;  %v2401_v34 = vadd.f32 %v4279_v23, %v2385_v3  ;;  %v2386_v36 = vmul.f32 %v3515_v57, %v2370_v22  ;;  %2444 = vst [vmem:[#allocation8 + $0x10] sm:$0xff] %v2432_v32 }
 0x207   : > { %2443 = vst [vmem:[#allocation8 + $0x8] sm:$0xff] %v2431_v28  ;;  %v2387_v37 = vmul.f32 %v3515_v57, %v2371_v18  ;;  %vm2411_vm10 = vcmp.ge.f32.partialorder %v2399_v38, 0.0  ;;  %v2423_v39 = vmul.f32 0.01, %v2399_v38  ;;  %vm2412_vm11 = vcmp.ge.f32.partialorder %v2400_v15, 0.0 }
 0x208   : > { %v2388_v49 = vmul.f32 %v3515_v57, %v2372_v21  ;;  %2445 = vst [vmem:[#allocation8 + $0x18] sm:$0xff] %v2433_v30  ;;  %v2424_v40 = vmul.f32 0.01, %v2400_v15  ;;  %vm2413_vm12 = vcmp.ge.f32.partialorder %v2401_v34, 0.0  ;;  %v2425_v42 = vmul.f32 0.01, %v2401_v34 }
 0x209   : > { %v2402_v26 = vadd.f32 %v4279_v23, %v2386_v36  ;;  %2446 = vst [vmem:[#allocation8 + $0x20] sm:$0xff] %v2434_v33  ;;  %v2435_v43 = vsel %vm2411_vm10, %v2399_v38, %v2423_v39  ;;  %v2403_v45 = vadd.f32 %v4279_v23, %v2387_v37  ;;  %v2389_v55 = vmul.f32 %v3515_v57, %v2373_v25 }
 0x20a   : > { %v2404_v58 = vadd.f32 %v4279_v23, %v2388_v49  ;;  %2447 = vst [vmem:[#allocation8 + $0x28] sm:$0xff] %v2435_v43  ;;  %v2436_v46 = vsel %vm2412_vm11, %v2400_v15, %v2424_v40  ;;  %v2437_v47 = vsel %vm2413_vm12, %v2401_v34, %v2425_v42 }
 0x20b   : > { %vm2414_vm13 = vcmp.ge.f32.partialorder %v2402_v26, 0.0  ;;  %v2426_v31 = vmul.f32 0.01, %v2402_v26  ;;  %2448 = vst [vmem:[#allocation8 + $0x30] sm:$0xff] %v2436_v46  ;;  %vm2415_vm14 = vcmp.ge.f32.partialorder %v2403_v45, 0.0  ;;  %v2405_v44 = vadd.f32 %v4279_v23, %v2389_v55 }
 0x20c   : > { %v2427_v24 = vmul.f32 0.01, %v2403_v45  ;;  %vm2416_vm15 = vcmp.ge.f32.partialorder %v2404_v58, 0.0  ;;  %2449 = vst [vmem:[#allocation8 + $0x38] sm:$0xff] %v2437_v47  ;;  %v2428_v16 = vmul.f32 0.01, %v2404_v58 }
 0x20d   : > { %v2438_v50 = vsel %vm2414_vm13, %v2402_v26, %v2426_v31  ;;  %vm2417_vm0 = vcmp.ge.f32.partialorder %v2405_v44, 0.0  ;;  %v2429_v41 = vmul.f32 0.01, %v2405_v44 }
 0x20e   : > { %2450 = vst [vmem:[#allocation8 + $0x40] sm:$0xff] %v2438_v50  ;;  %v2439_v5 = vsel %vm2415_vm14, %v2403_v45, %v2427_v24  ;;  %v2440_v52 = vsel %vm2416_vm15, %v2404_v58, %v2428_v16 }
 0x20f   : > { %2451 = vst [vmem:[#allocation8 + $0x48] sm:$0xff] %v2439_v5  ;;  %v2441_v53 = vsel %vm2417_vm0, %v2405_v44, %v2429_v41 }
 0x210   : > { %2452 = vst [vmem:[#allocation8 + $0x50] sm:$0xff] %v2440_v52 }
 0x211   : > { %2453 = vst [vmem:[#allocation8 + $0x58] sm:$0xff] %v2441_v53 }
 0x212 PF: > { %s4331_s21 = sadd.s32 4294967295, %s3751_s23   ;;  %s2467_s14 = sshll.u32 %s4321_s5, 4  ;;  %s2468_s14 = int_to_ptr.hbm [resolvable:$true] %s2467_s14 }
 0x213   : > { %p3458_p12 = scmp.eq.s32.totalorder %s4331_s21, 1  ;;  %s3758_s16 = smov [#allocation8]  }
 0x214   : > { %s2465_s10 = sshll.u32 %s3758_s16, 4  ;;  %s3759_s8 = smov 128   ;;  %s2466_s10 = int_to_ptr.vmem [resolvable:$true] %s2465_s10 }
 0x215   : > { %s3760_s12 = smov 8  }
 0x216   : > { %3441 = dma.vmem_to_hbm [thread:$0]  (%p3458_p12), %s2466_s10, 1536, %s2468_s14, [#allocation7], %s3759_s8, %s3759_s8, %s3760_s12  }
 0x217   : > { %3726 = dma.done.wait (%p3458_p12), [#allocation7], 1536  }
 0x218   : > { %3728 = vsyncadd (%p3458_p12), [#allocation7], 4294965760 }
 0x219 PF: > { %s19_s23 = sadd.s32 1, %s3751_s23   ;;  %s4332_s18 = smov %s3735_s19 }
 0x21a   : > { %p16_p6 = scmp.ge.s32.totalorder %s19_s23, 4   ;;  %s4333_s19 = smov %s3739_s20 }
 0x21b   : > { %s4334_s20 = smov %s3838_s29  ;;  %s4335_s21 = smov %s3747_s22 }
 0x21c   : > { %s4336_s22 = smov %s4338_s25  ;;  %18 = sbr.rel (!%p16_p6) target bundleno = 5 (0x5), region = 139 }
 0x221   :  { %2484 = vsyncpa [#allocation6], 1 }
 0x222   :  { %2486 = vsyncpa [#allocation6 + $0x1], 1 }
 0x223   :  { %2487 = vsyncpa [#allocation7], 1 }
 0x224   :  { %2489 = vsyncpa [#allocation7 + $0x1], 1 }
 0x225   :  { %2490 = vsyncmov [#allocation4] }
 0x228   :  { %s2491_s15 = vpop.sfrf %2490 }
 0x229   :  { %p3276_p5 = scmp.ne.s32.totalorder %s2491_s15, 0 }
 0x22b   :  { %2495 = shalt.err (%p3276_p5)  }
 0x22c   :  { %2497 = vsyncmov [#allocation4 + $0x1] }
 0x22f   :  { %s2498_s11 = vpop.sfrf %2497 }
 0x230   :  { %p3277_p8 = scmp.ne.s32.totalorder %s2498_s11, 0 }
 0x232   :  { %2502 = shalt.err (%p3277_p8)  }

</bundles_post_ra>
